<compile_context>
chip_gen: v5e
topology: v5e:2x2
jax: 0.10.0
libtpu: 0.0.40
codegen_flags: <defaults>
</compile_context>

<pallas_src>
import functools

import jax
import jax.numpy as jnp
from jax import lax
from jax.experimental import pallas as pl
from jax.experimental.pallas import tpu as pltpu


def explainer_kernel(idx_ref, embed_ref, w_ref,
                     mask_ref, masked_adj_ref, edge_mask_ref, adj_acc):
    p = pl.program_id(0)          # 0 = scatter/accumulate pass, 1 = finalize + gather
    e = pl.program_id(1)          # edge-tile index
    n_pad = mask_ref.shape[0]
    et = idx_ref.shape[1]

    # ---- per-tile one-hot selectors, [N_pad, E_TILE] layout (lane axis = edges) ----
    # Padded edges carry node index n_pad (out of range) -> all-zero columns.
    row = idx_ref[0:1, :]                                        # [1, et] int32
    col = idx_ref[1:2, :]                                        # [1, et] int32
    node_iota = lax.broadcasted_iota(jnp.int32, (n_pad, et), 0)
    rt = (node_iota == row).astype(jnp.float32)                  # [n_pad, et]
    ct = (node_iota == col).astype(jnp.float32)                  # [n_pad, et]

    # Contract the edge (lane) axis of both operands (flash-attn style q@k.T form,
    # handled natively by the MXU; no explicit XLU operand transpose emitted).
    dn = (((1,), (1,)), ((), ()))

    @pl.when((p == 0) & (e == 0))
    def _init():
        mask_ref[...] = jnp.zeros_like(mask_ref)
        adj_acc[...] = jnp.zeros_like(adj_acc)

    @pl.when(p == 0)
    def _scatter():
        # Linear(2D -> 1) as per-node partial scores (VPU mul + lane reduce).
        # The bias is folded into w[0] via the constant-1 embed column.
        embed = embed_ref[...]                                   # [n_pad, d_pad]
        s1 = jnp.sum(embed * w_ref[0:1, :], axis=-1, keepdims=True)   # [n_pad, 1]
        s2 = jnp.sum(embed * w_ref[1:2, :], axis=-1, keepdims=True)   # [n_pad, 1]

        # Fused selector gather: one [n_pad, et] temp, one sublane reduce.
        vals = jax.nn.sigmoid(
            jnp.sum(rt * s1 + ct * s2, axis=0, keepdims=True))   # [1, et]

        # mask[n, m] += sum_e rt[n,e] * vals[e] * ct[m,e]   (f32 MXU, exact scatter)
        mask_ref[...] += lax.dot_general(rt, vals * ct, dn,
                                         preferred_element_type=jnp.float32)
        # adj[n, m]  += sum_e rt[n,e] * ct[m,e]             (bf16 MXU, exact for 0/1)
        adj_acc[...] += lax.dot_general(rt.astype(jnp.bfloat16),
                                        ct.astype(jnp.bfloat16), dn,
                                        preferred_element_type=jnp.float32)

        # Keep the tiled edge_mask block defined; overwritten in pass 1.
        edge_mask_ref[...] = jnp.zeros_like(edge_mask_ref)

    @pl.when(p == 1)
    def _gather():
        @pl.when(e == 0)
        def _finalize():
            m = mask_ref[...]
            masked_adj_ref[...] = adj_acc[...] * (m + m.T) * 0.5   # single XLU transpose

        # edge_mask[e] = masked_adj[row[e], col[e]]:
        #   g[n, e] = sum_m masked_adj[n, m] * ct[m, e]   (standard f32 MXU matmul)
        #   em[e]   = sum_n rt[n, e] * g[n, e]            (VPU + sublane reduce)
        g = jnp.dot(masked_adj_ref[...], ct, preferred_element_type=jnp.float32)
        edge_mask_ref[...] = jnp.sum(rt * g, axis=0, keepdims=True)  # [1, et]


def _round_up(x, m):
    return ((x + m - 1) // m) * m


@functools.partial(jax.jit, static_argnames=("num_nodes", "edge_tile"))
def explainer_gc_forward(embed, edge_index, weight, bias, num_nodes, *, edge_tile=512):
    """embed: [N, D] f32; edge_index: [2, E] int; weight: [1, 2D] (torch Linear);
    bias: scalar. Returns (mask [N,N], masked_adj [N,N], edge_mask [E])."""
    N, D = embed.shape
    E = edge_index.shape[1]

    n_pad = _round_up(max(num_nodes, 1), 128)      # lane-dense [N,N] outputs
    d_pad = _round_up(D + 1, 128)                  # +1 column carries the bias
    e128 = _round_up(max(E, 1), 128)
    e_tile = min(edge_tile, e128)
    e_pad = _round_up(e128, e_tile)
    n_tiles = e_pad // e_tile

    # Padded edges get an out-of-range node index -> zero selector columns.
    idx = jnp.pad(edge_index.astype(jnp.int32), ((0, 0), (0, e_pad - E)),
                  constant_values=n_pad)

    # Zero-pad embed to [n_pad, d_pad]; column D is a constant 1.0 so the Linear
    # bias can be folded into w[0, D] (no SMEM scalar input).
    embed_p = jnp.zeros((n_pad, d_pad), jnp.float32)
    embed_p = embed_p.at[:N, :D].set(embed.astype(jnp.float32))
    embed_p = embed_p.at[:N, D].set(1.0)

    # Split the torch Linear weight [1, 2D] into the f1/f2 halves -> [2, d_pad].
    w = jnp.zeros((2, d_pad), jnp.float32)
    w = w.at[0, :D].set(weight[0, :D].astype(jnp.float32))
    w = w.at[1, :D].set(weight[0, D:].astype(jnp.float32))
    w = w.at[0, D].set(jnp.asarray(bias, jnp.float32))

    grid = (2, n_tiles)   # pass axis (scatter / finalize+gather), edge-tile axis

    # VMEM budget: resident [n_pad, n_pad] mask/masked_adj/adj_acc + per-tile
    # selector temps + embed, with slack; clamp into the scoped-VMEM range.
    vmem_limit = int(3 * n_pad * n_pad * 4 + 12 * n_pad * e_tile * 4
                     + 4 * n_pad * d_pad * 4 + (2 << 20))
    vmem_limit = max(32 << 20, min(vmem_limit, 64 << 20))

    cost = pl.CostEstimate(
        flops=2 * 3 * n_pad * n_pad * e_pad,            # 2 scatter matmuls + gather matmul
        transcendentals=e_pad,                          # sigmoid per edge
        bytes_accessed=(2 * e_pad * 4 + n_pad * d_pad * 4 + 2 * d_pad * 4
                        + 2 * n_pad * n_pad * 4 + e_pad * 4))

    out_shapes = (
        jax.ShapeDtypeStruct((n_pad, n_pad), jnp.float32),   # self.mask
        jax.ShapeDtypeStruct((n_pad, n_pad), jnp.float32),   # self.masked_adj
        jax.ShapeDtypeStruct((1, e_pad), jnp.float32),       # edge_mask (lane-dense row)
    )

    mask, masked_adj, edge_mask = pl.pallas_call(
        explainer_kernel,
        out_shape=out_shapes,
        grid_spec=pltpu.PrefetchScalarGridSpec(
            num_scalar_prefetch=0,
            grid=grid,
            in_specs=[
                pl.BlockSpec((2, e_tile), lambda p, e: (0, e)),        # idx tile
                pl.BlockSpec((n_pad, d_pad), lambda p, e: (0, 0)),     # embed (resident)
                pl.BlockSpec((2, d_pad), lambda p, e: (0, 0)),         # weights (resident)
            ],
            out_specs=(
                pl.BlockSpec((n_pad, n_pad), lambda p, e: (0, 0)),     # mask accumulator
                pl.BlockSpec((n_pad, n_pad), lambda p, e: (0, 0)),     # masked_adj
                pl.BlockSpec((1, e_tile), lambda p, e: (0, e)),        # edge_mask tile
            ),
            scratch_shapes=[pltpu.VMEM((n_pad, n_pad), jnp.float32)],  # adj accumulator
        ),
        compiler_params=pltpu.CompilerParams(
            dimension_semantics=("arbitrary", "arbitrary"),
            vmem_limit_bytes=vmem_limit),
        cost_estimate=cost,
    )(idx, embed_p, w)

    return (mask[:num_nodes, :num_nodes],
            masked_adj[:num_nodes, :num_nodes],
            edge_mask[0, :E])


if __name__ == "__main__":
    key = jax.random.PRNGKey(0)
    N, D, E = 16, 16, 64          # hiddens[-1] = 16  =>  Linear input_dim = 32
    k1, k2, k3, k4, k5 = jax.random.split(key, 5)

    embed = jax.random.normal(k1, (N, D), dtype=jnp.float32)
    row = jax.random.randint(k2, (E,), 0, N, dtype=jnp.int32)
    col = jax.random.randint(k3, (E,), 0, N, dtype=jnp.int32)
    edge_index = jnp.stack([row, col])

    # Deterministic Linear(2D -> 1) parameters (synthetic, not a checkpoint).
    weight = jax.random.normal(k4, (1, 2 * D), dtype=jnp.float32) / jnp.sqrt(2.0 * D)
    bias = jax.random.normal(k5, (), dtype=jnp.float32) * 0.01

    mask, masked_adj, edge_mask = explainer_gc_forward(embed, edge_index,
                                                       weight, bias, N)
    jax.block_until_ready((mask, masked_adj, edge_mask))

    # Pure-JAX reference of the same forward semantics.
    f1 = embed[row]
    f2 = embed[col]
    h = jnp.concatenate([f1, f2], axis=-1)
    scores = h @ weight.T + bias
    values = jax.nn.sigmoid(scores.reshape(-1))
    adj_ref = jnp.zeros((N, N), jnp.float32).at[row, col].add(1.0)
    mask_ref = jnp.zeros((N, N), jnp.float32).at[row, col].add(values)
    sym_ref = (mask_ref + mask_ref.T) * 0.5
    masked_adj_ref = adj_ref * sym_ref
    edge_mask_ref = masked_adj_ref[row, col]

    assert jnp.allclose(mask, mask_ref, atol=1e-5), "mask mismatch"
    assert jnp.allclose(masked_adj, masked_adj_ref, atol=1e-5), "masked_adj mismatch"
    assert jnp.allclose(edge_mask, edge_mask_ref, atol=1e-5), "edge_mask mismatch"

    print("KERNEL_OK")
</pallas_src>

<mosaic_0001>
module attributes {stable_mosaic.version = 11 : i64} {
  func.func @explainer_kernel(%arg0: i32, %arg1: i32, %arg2: memref<2x128xi32, #tpu.memory_space<vmem>>, %arg3: memref<128x128xf32, #tpu.memory_space<vmem>>, %arg4: memref<2x128xf32, #tpu.memory_space<vmem>>, %arg5: memref<128x128xf32, #tpu.memory_space<vmem>>, %arg6: memref<128x128xf32, #tpu.memory_space<vmem>>, %arg7: memref<1x128xf32, #tpu.memory_space<vmem>>, %arg8: memref<128x128xf32, #tpu.memory_space<vmem>>) attributes {dimension_semantics = [#tpu.dimension_semantics<arbitrary>, #tpu.dimension_semantics<arbitrary>], iteration_bounds = array<i64: 2, 1>, scalar_prefetch = 0 : i64, scratch_operands = 1 : i64, tpu.core_type = #tpu.core_type<tc>, window_params = [{transform_indices = @transform_0, window_bounds = array<i64: 2, 128>}, {pipeline_mode = #tpu.pipeline_mode<synchronous>, transform_indices = @transform_1, window_bounds = array<i64: 128, 128>}, {pipeline_mode = #tpu.pipeline_mode<synchronous>, transform_indices = @transform_2, window_bounds = array<i64: 2, 128>}, {pipeline_mode = #tpu.pipeline_mode<synchronous>, transform_indices = @transform_3, window_bounds = array<i64: 128, 128>}, {pipeline_mode = #tpu.pipeline_mode<synchronous>, transform_indices = @transform_4, window_bounds = array<i64: 128, 128>}, {transform_indices = @transform_5, window_bounds = array<i64: 1, 128>}]} {
    %c0 = arith.constant 0 : index
    %c0_0 = arith.constant 0 : index
    %0 = vector.load %arg2[%c0, %c0_0] : memref<2x128xi32, #tpu.memory_space<vmem>>, vector<1x128xi32>
    %c1 = arith.constant 1 : index
    %c0_1 = arith.constant 0 : index
    %1 = vector.load %arg2[%c1, %c0_1] : memref<2x128xi32, #tpu.memory_space<vmem>>, vector<1x128xi32>
    %2 = tpu.iota {dimensions = array<i32: 0>} : vector<128x128xi32>
    %3 = vector.broadcast %0 : vector<1x128xi32> to vector<128x128xi32>
    %4 = arith.cmpi eq, %2, %3 : vector<128x128xi32>
    %5 = arith.extui %4 : vector<128x128xi1> to vector<128x128xi32>
    %6 = arith.sitofp %5 : vector<128x128xi32> to vector<128x128xf32>
    %7 = vector.broadcast %1 : vector<1x128xi32> to vector<128x128xi32>
    %8 = arith.cmpi eq, %2, %7 : vector<128x128xi32>
    %9 = arith.extui %8 : vector<128x128xi1> to vector<128x128xi32>
    %10 = arith.sitofp %9 : vector<128x128xi32> to vector<128x128xf32>
    %c0_i32 = arith.constant 0 : i32
    %11 = arith.cmpi eq, %arg0, %c0_i32 : i32
    %c0_i32_2 = arith.constant 0 : i32
    %12 = arith.cmpi eq, %arg1, %c0_i32_2 : i32
    %13 = arith.andi %11, %12 : i1
    %14 = arith.extui %13 : i1 to i32
    %c0_i32_3 = arith.constant 0 : i32
    %15 = arith.cmpi ne, %14, %c0_i32_3 : i32
    scf.if %15 {
      %cst = arith.constant 0.000000e+00 : f32
      %22 = vector.broadcast %cst : f32 to vector<128x128xf32>
      %c0_7 = arith.constant 0 : index
      %c0_8 = arith.constant 0 : index
      %23 = vector.load %arg5[%c0_7, %c0_8] : memref<128x128xf32, #tpu.memory_space<vmem>>, vector<128x128xf32>
      tpu.vector_store %arg5[%c0_7, %c0_8], %22 {strides = array<i32>} : memref<128x128xf32, #tpu.memory_space<vmem>>, vector<128x128xf32>,
      %cst_9 = arith.constant 0.000000e+00 : f32
      %24 = vector.broadcast %cst_9 : f32 to vector<128x128xf32>
      %c0_10 = arith.constant 0 : index
      %c0_11 = arith.constant 0 : index
      %25 = vector.load %arg8[%c0_10, %c0_11] : memref<128x128xf32, #tpu.memory_space<vmem>>, vector<128x128xf32>
      tpu.vector_store %arg8[%c0_10, %c0_11], %24 {strides = array<i32>} : memref<128x128xf32, #tpu.memory_space<vmem>>, vector<128x128xf32>,
    } else {
    }
    %c0_i32_4 = arith.constant 0 : i32
    %16 = arith.cmpi eq, %arg0, %c0_i32_4 : i32
    %17 = arith.extui %16 : i1 to i32
    %c0_i32_5 = arith.constant 0 : i32
    %18 = arith.cmpi ne, %17, %c0_i32_5 : i32
    scf.if %18 {
      %c0_7 = arith.constant 0 : index
      %c0_8 = arith.constant 0 : index
      %22 = vector.load %arg3[%c0_7, %c0_8] : memref<128x128xf32, #tpu.memory_space<vmem>>, vector<128x128xf32>
      %c0_9 = arith.constant 0 : index
      %c0_10 = arith.constant 0 : index
      %23 = vector.load %arg4[%c0_9, %c0_10] : memref<2x128xf32, #tpu.memory_space<vmem>>, vector<1x128xf32>
      %24 = vector.broadcast %23 : vector<1x128xf32> to vector<128x128xf32>
      %25 = arith.mulf %22, %24 : vector<128x128xf32>
      %cst = arith.constant dense<0.000000e+00> : vector<128xf32>
      %26 = vector.multi_reduction <add>, %25, %cst [1] : vector<128x128xf32> to vector<128xf32>
      %27 = vector.shape_cast %26 : vector<128xf32> to vector<128x1xf32>
      %c1_11 = arith.constant 1 : index
      %c0_12 = arith.constant 0 : index
      %28 = vector.load %arg4[%c1_11, %c0_12] : memref<2x128xf32, #tpu.memory_space<vmem>>, vector<1x128xf32>
      %29 = vector.broadcast %28 : vector<1x128xf32> to vector<128x128xf32>
      %30 = arith.mulf %22, %29 : vector<128x128xf32>
      %cst_13 = arith.constant dense<0.000000e+00> : vector<128xf32>
      %31 = vector.multi_reduction <add>, %30, %cst_13 [1] : vector<128x128xf32> to vector<128xf32>
      %32 = vector.shape_cast %31 : vector<128xf32> to vector<128x1xf32>
      %33 = vector.broadcast %27 : vector<128x1xf32> to vector<128x128xf32>
      %34 = arith.mulf %6, %33 : vector<128x128xf32>
      %35 = vector.broadcast %32 : vector<128x1xf32> to vector<128x128xf32>
      %36 = arith.mulf %10, %35 : vector<128x128xf32>
      %37 = arith.addf %34, %36 : vector<128x128xf32>
      %cst_14 = arith.constant dense<0.000000e+00> : vector<128xf32>
      %38 = vector.multi_reduction <add>, %37, %cst_14 [0] : vector<128x128xf32> to vector<128xf32>
      %39 = vector.shape_cast %38 : vector<128xf32> to vector<1x128xf32>
      %40 = arith.negf %39 : vector<1x128xf32>
      %41 = math.exp %40 : vector<1x128xf32>
      %cst_15 = arith.constant 1.000000e+00 : f32
      %42 = vector.broadcast %cst_15 : f32 to vector<1x128xf32>
      %43 = arith.addf %42, %41 : vector<1x128xf32>
      %44 = arith.divf %42, %43 : vector<1x128xf32>
      %c0_16 = arith.constant 0 : index
      %c0_17 = arith.constant 0 : index
      %45 = vector.load %arg5[%c0_16, %c0_17] : memref<128x128xf32, #tpu.memory_space<vmem>>, vector<128x128xf32>
      %46 = vector.broadcast %44 : vector<1x128xf32> to vector<128x128xf32>
      %47 = arith.mulf %46, %10 : vector<128x128xf32>
      %cst_18 = arith.constant dense<0.000000e+00> : vector<128x128xf32>
      %48 = tpu.matmul %6, %47, %cst_18 {dimension_numbers = #tpu.dot_dimension_numbers<[1], [1], [0], [0], [0, 0, 1, 0], [], []>} : vector<128x128xf32>, vector<128x128xf32>, vector<128x128xf32> -> vector<128x128xf32>
      %49 = arith.addf %45, %48 : vector<128x128xf32>
      %c0_19 = arith.constant 0 : index
      %c0_20 = arith.constant 0 : index
      %50 = vector.load %arg5[%c0_19, %c0_20] : memref<128x128xf32, #tpu.memory_space<vmem>>, vector<128x128xf32>
      tpu.vector_store %arg5[%c0_19, %c0_20], %49 {strides = array<i32>} : memref<128x128xf32, #tpu.memory_space<vmem>>, vector<128x128xf32>,
      %c0_21 = arith.constant 0 : index
      %c0_22 = arith.constant 0 : index
      %51 = vector.load %arg8[%c0_21, %c0_22] : memref<128x128xf32, #tpu.memory_space<vmem>>, vector<128x128xf32>
      %52 = arith.truncf %6 : vector<128x128xf32> to vector<128x128xbf16>
      %53 = arith.truncf %10 : vector<128x128xf32> to vector<128x128xbf16>
      %cst_23 = arith.constant dense<0.000000e+00> : vector<128x128xf32>
      %54 = tpu.matmul %52, %53, %cst_23 {dimension_numbers = #tpu.dot_dimension_numbers<[1], [1], [0], [0], [0, 0, 1, 0], [], []>} : vector<128x128xbf16>, vector<128x128xbf16>, vector<128x128xf32> -> vector<128x128xf32>
      %55 = arith.addf %51, %54 : vector<128x128xf32>
      %c0_24 = arith.constant 0 : index
      %c0_25 = arith.constant 0 : index
      %56 = vector.load %arg8[%c0_24, %c0_25] : memref<128x128xf32, #tpu.memory_space<vmem>>, vector<128x128xf32>
      tpu.vector_store %arg8[%c0_24, %c0_25], %55 {strides = array<i32>} : memref<128x128xf32, #tpu.memory_space<vmem>>, vector<128x128xf32>,
      %cst_26 = arith.constant 0.000000e+00 : f32
      %57 = vector.broadcast %cst_26 : f32 to vector<1x128xf32>
      %c0_27 = arith.constant 0 : index
      %c0_28 = arith.constant 0 : index
      %58 = vector.load %arg7[%c0_27, %c0_28] : memref<1x128xf32, #tpu.memory_space<vmem>>, vector<1x128xf32>
      tpu.vector_store %arg7[%c0_27, %c0_28], %57 {strides = array<i32>} : memref<1x128xf32, #tpu.memory_space<vmem>>, vector<1x128xf32>,
    } else {
    }
    %c1_i32 = arith.constant 1 : i32
    %19 = arith.cmpi eq, %arg0, %c1_i32 : i32
    %20 = arith.extui %19 : i1 to i32
    %c0_i32_6 = arith.constant 0 : i32
    %21 = arith.cmpi ne, %20, %c0_i32_6 : i32
    scf.if %21 {
      %c0_i32_7 = arith.constant 0 : i32
      %22 = arith.cmpi eq, %arg1, %c0_i32_7 : i32
      %23 = arith.extui %22 : i1 to i32
      %c0_i32_8 = arith.constant 0 : i32
      %24 = arith.cmpi ne, %23, %c0_i32_8 : i32
      scf.if %24 {
        %c0_14 = arith.constant 0 : index
        %c0_15 = arith.constant 0 : index
        %31 = vector.load %arg5[%c0_14, %c0_15] : memref<128x128xf32, #tpu.memory_space<vmem>>, vector<128x128xf32>
        %c0_16 = arith.constant 0 : index
        %c0_17 = arith.constant 0 : index
        %32 = vector.load %arg8[%c0_16, %c0_17] : memref<128x128xf32, #tpu.memory_space<vmem>>, vector<128x128xf32>
        %33 = tpu.transpose %31, [1, 0] : vector<128x128xf32> -> vector<128x128xf32>
        %34 = arith.addf %31, %33 : vector<128x128xf32>
        %35 = arith.mulf %32, %34 : vector<128x128xf32>
        %cst_18 = arith.constant 5.000000e-01 : f32
        %36 = vector.broadcast %cst_18 : f32 to vector<128x128xf32>
        %37 = arith.mulf %35, %36 : vector<128x128xf32>
        %c0_19 = arith.constant 0 : index
        %c0_20 = arith.constant 0 : index
        %38 = vector.load %arg6[%c0_19, %c0_20] : memref<128x128xf32, #tpu.memory_space<vmem>>, vector<128x128xf32>
        tpu.vector_store %arg6[%c0_19, %c0_20], %37 {strides = array<i32>} : memref<128x128xf32, #tpu.memory_space<vmem>>, vector<128x128xf32>,
      } else {
      }
      %c0_9 = arith.constant 0 : index
      %c0_10 = arith.constant 0 : index
      %25 = vector.load %arg6[%c0_9, %c0_10] : memref<128x128xf32, #tpu.memory_space<vmem>>, vector<128x128xf32>
      %cst = arith.constant dense<0.000000e+00> : vector<128x128xf32>
      %26 = tpu.matmul %25, %10, %cst {dimension_numbers = #tpu.dot_dimension_numbers<[1], [0], [0], [1], [0, 0, 1, 1], [], []>} : vector<128x128xf32>, vector<128x128xf32>, vector<128x128xf32> -> vector<128x128xf32>
      %27 = arith.mulf %6, %26 : vector<128x128xf32>
      %cst_11 = arith.constant dense<0.000000e+00> : vector<128xf32>
      %28 = vector.multi_reduction <add>, %27, %cst_11 [0] : vector<128x128xf32> to vector<128xf32>
      %29 = vector.shape_cast %28 : vector<128xf32> to vector<1x128xf32>
      %c0_12 = arith.constant 0 : index
      %c0_13 = arith.constant 0 : index
      %30 = vector.load %arg7[%c0_12, %c0_13] : memref<1x128xf32, #tpu.memory_space<vmem>>, vector<1x128xf32>
      tpu.vector_store %arg7[%c0_12, %c0_13], %29 {strides = array<i32>} : memref<1x128xf32, #tpu.memory_space<vmem>>, vector<1x128xf32>,
    } else {
    }
    return
  }
  func.func @transform_0(%arg0: i32, %arg1: i32) -> (i32, i32) {
    %c0_i32 = arith.constant 0 : i32
    %c0_i32_0 = arith.constant 0 : i32
    return %c0_i32, %arg1 : i32, i32
  }
  func.func @transform_1(%arg0: i32, %arg1: i32) -> (i32, i32) {
    %c0_i32 = arith.constant 0 : i32
    %c0_i32_0 = arith.constant 0 : i32
    %c0_i32_1 = arith.constant 0 : i32
    return %c0_i32, %c0_i32_0 : i32, i32
  }
  func.func @transform_2(%arg0: i32, %arg1: i32) -> (i32, i32) {
    %c0_i32 = arith.constant 0 : i32
    %c0_i32_0 = arith.constant 0 : i32
    %c0_i32_1 = arith.constant 0 : i32
    return %c0_i32, %c0_i32_0 : i32, i32
  }
  func.func @transform_3(%arg0: i32, %arg1: i32) -> (i32, i32) {
    %c0_i32 = arith.constant 0 : i32
    %c0_i32_0 = arith.constant 0 : i32
    %c0_i32_1 = arith.constant 0 : i32
    return %c0_i32, %c0_i32_0 : i32, i32
  }
  func.func @transform_4(%arg0: i32, %arg1: i32) -> (i32, i32) {
    %c0_i32 = arith.constant 0 : i32
    %c0_i32_0 = arith.constant 0 : i32
    %c0_i32_1 = arith.constant 0 : i32
    return %c0_i32, %c0_i32_0 : i32, i32
  }
  func.func @transform_5(%arg0: i32, %arg1: i32) -> (i32, i32) {
    %c0_i32 = arith.constant 0 : i32
    %c0_i32_0 = arith.constant 0 : i32
    return %c0_i32, %arg1 : i32, i32
  }
}

</mosaic_0001>

<bundles_post_ra>
// kernel: explainer_gc_forward.1
= control target key start
LH: loop header
LB: loop body
LE: loop exit
PB: predicated region body
PF: predicated region fallthrough
CT: control target
= control target key end

     0   :  { %s1430_s18 = smov 0   ;;  %s1432_s19 = smov 0   ;;  %s2601_s0 = inlined_call_operand.vmem [shape: s32[2,128], index: 0, kind: input, shape index: {}]   ;;  %s2602_s1 = inlined_call_operand.vmem [shape: f32[128,128], index: 1, kind: input, shape index: {}]   ;;  %s2603_s2 = inlined_call_operand.vmem [shape: f32[2,128], index: 2, kind: input, shape index: {}]   ;;  %s2604_s3 = inlined_call_operand.vmem [shape: f32[128,128], index: 3, kind: output, shape index: {0}]   ;;  %s2605_s4 = inlined_call_operand.vmem [shape: f32[128,128], index: 4, kind: output, shape index: {1}]   ;;  %s2606_s5 = inlined_call_operand.vmem [shape: f32[1,128], index: 5, kind: output, shape index: {2}]  }
   0x1   :  { %s1434_s20 = smov 0  }
   0x2 LB: > { %s28_s21 = sadd.s32 1, %s1388_s19  ;;  %p1155_p0 = scmp.ge.s32.totalorder %s1392_s20, 1  ;;  %s1392_s20 = sphi %s1434_s20, %s16_s20   ;;  %s1388_s19 = sphi %s1432_s19, %s2851_s19   ;;  %s1384_s18 = sphi %s1430_s18, %s2850_s18  }
   0x3   : > { %p30_p1 = scmp.ge.s32.totalorder %s28_s21, 2  ;;  %p193_p2 = scmp.lt.s32.totalorder %s1392_s20, 3 }
   0x5   : > { %s2853_s21 = smov (%p30_p1, %s28_s21), 0  ;;  %p194_p3 = pnand %p1155_p0, %p193_p2 }
   0x7   : > { %197 = sbr.rel (%p194_p3) target bundleno = 1037 (0x40d), region = 32 }
   0xc   : > { %v227_v0 = vlaneseq  ;;  %p342_p4 = scmp.eq.s32.totalorder %s1384_s18, 0  ;;  %v1456_v2 = vld [vmem:[%s2601_s0] ss:$0 sm:$0xff]  ;;  %v1394_v18 = vmov 0.0   ;;  %v1363_v20 = vld [vmem:[%s2601_s0 + $0x1] ss:$0 sm:$0xff] }
   0xd   : > { %2701 = vst [vmem:[#allocation4_spill] sm:$0xff] %v1456_v2  ;;  %v2719_v36 = vmov 0  ;;  %v2722_v37 = vmov 0  ;;  %v2725_v38 = vmov 0  ;;  %v2728_v39 = vmov 0 }
   0xe   : > { %v1451_v1 = vshrl.u32 %v227_v0, 7  ;;  %v2731_v40 = vmov 0  ;;  %v2734_v41 = vmov 0  ;;  %v2737_v42 = vmov 0 }
   0xf   : > { %v2740_v43 = vmov 0  ;;  %v2743_v44 = vmov 0  ;;  %v2746_v45 = vmov 0  ;;  %v2749_v46 = vmov 0 }
  0x10   : > { %2700 = vst [vmem:[#allocation3_spill] sm:$0xff] %v1451_v1  ;;  %v1459_v3 = vadd.s32 8, %v1451_v1  ;;  %v1462_v4 = vadd.s32 16, %v1451_v1  ;;  %v1465_v5 = vadd.s32 24, %v1451_v1  ;;  %v1468_v6 = vadd.s32 32, %v1451_v1 }
  0x11   : > { %v1471_v7 = vadd.s32 40, %v1451_v1  ;;  %v1474_v8 = vadd.s32 48, %v1451_v1  ;;  %v1477_v9 = vadd.s32 56, %v1451_v1  ;;  %v1480_v10 = vadd.s32 64, %v1451_v1 }
  0x12   : > { %2702 = vst [vmem:[#allocation5_spill] sm:$0xff] %v1459_v3  ;;  %v1483_v11 = vadd.s32 72, %v1451_v1  ;;  %v1486_v12 = vadd.s32 80, %v1451_v1  ;;  %v1489_v13 = vadd.s32 88, %v1451_v1  ;;  %v1492_v14 = vadd.s32 96, %v1451_v1 }
  0x13   : > { %2703 = vst [vmem:[#allocation6_spill] sm:$0xff] %v1462_v4  ;;  %v1495_v15 = vadd.s32 104, %v1451_v1  ;;  %v1498_v16 = vadd.s32 112, %v1451_v1  ;;  %v1501_v17 = vadd.s32 120, %v1451_v1  ;;  %vm2620_vm0 = vcmp.eq.s32.totalorder %v1451_v1, %v1456_v2 }
  0x14   : > { %2704 = vst [vmem:[#allocation7_spill] sm:$0xff] %v1465_v5  ;;  %vm2619_vm1 = vcmp.eq.s32.totalorder %v1459_v3, %v1456_v2  ;;  %vm2616_vm2 = vcmp.eq.s32.totalorder %v1462_v4, %v1456_v2  ;;  %vm2615_vm3 = vcmp.eq.s32.totalorder %v1465_v5, %v1456_v2  ;;  %vm2612_vm4 = vcmp.eq.s32.totalorder %v1468_v6, %v1456_v2 }
  0x15   : > { %2705 = vst [vmem:[#allocation8_spill] sm:$0xff] %v1468_v6  ;;  %vm2609_vm5 = vcmp.eq.s32.totalorder %v1471_v7, %v1456_v2  ;;  %vm2608_vm6 = vcmp.eq.s32.totalorder %v1474_v8, %v1456_v2  ;;  %vm2607_vm7 = vcmp.eq.s32.totalorder %v1477_v9, %v1456_v2  ;;  %vm2622_vm8 = vcmp.eq.s32.totalorder %v1480_v10, %v1456_v2 }
  0x16   : > { %2706 = vst [vmem:[#allocation9_spill] sm:$0xff] %v1471_v7  ;;  %vm2621_vm9 = vcmp.eq.s32.totalorder %v1483_v11, %v1456_v2  ;;  %vm2618_vm10 = vcmp.eq.s32.totalorder %v1486_v12, %v1456_v2  ;;  %vm2617_vm11 = vcmp.eq.s32.totalorder %v1489_v13, %v1456_v2  ;;  %vm2614_vm12 = vcmp.eq.s32.totalorder %v1492_v14, %v1456_v2 }
  0x17   : > { %2707 = vst [vmem:[#allocation10_spill] sm:$0xff] %v1474_v8  ;;  %vm2613_vm13 = vcmp.eq.s32.totalorder %v1495_v15, %v1456_v2  ;;  %vm2610_vm14 = vcmp.eq.s32.totalorder %v1498_v16, %v1456_v2  ;;  %vm2611_vm15 = vcmp.eq.s32.totalorder %v1501_v17, %v1456_v2  ;;  %v1538_v19 = vsel %vm2620_vm0, 1.0, %v1394_v18 }
  0x18   : > { %2708 = vst [vmem:[#allocation11_spill] sm:$0xff] %v1477_v9  ;;  %v1546_v21 = vsel %vm2619_vm1, 1.0, %v1394_v18  ;;  %v1551_v22 = vsel %vm2616_vm2, 1.0, %v1394_v18  ;;  %v1556_v23 = vsel %vm2615_vm3, 1.0, %v1394_v18  ;;  %v1561_v24 = vsel %vm2612_vm4, 1.0, %v1394_v18 }
  0x19   : > { %2709 = vst [vmem:[#allocation12_spill] sm:$0xff] %v1480_v10  ;;  %v1566_v25 = vsel %vm2609_vm5, 1.0, %v1394_v18  ;;  %v1571_v26 = vsel %vm2608_vm6, 1.0, %v1394_v18  ;;  %v1576_v27 = vsel %vm2607_vm7, 1.0, %v1394_v18  ;;  %v1581_v28 = vsel %vm2622_vm8, 1.0, %v1394_v18 }
  0x1a   : > { %2710 = vst [vmem:[#allocation13_spill] sm:$0xff] %v1483_v11  ;;  %v1586_v29 = vsel %vm2621_vm9, 1.0, %v1394_v18  ;;  %v1591_v30 = vsel %vm2618_vm10, 1.0, %v1394_v18  ;;  %v1596_v31 = vsel %vm2617_vm11, 1.0, %v1394_v18  ;;  %v1601_v32 = vsel %vm2614_vm12, 1.0, %v1394_v18 }
  0x1b   : > { %2711 = vst [vmem:[#allocation14_spill] sm:$0xff] %v1486_v12  ;;  %v1606_v33 = vsel %vm2613_vm13, 1.0, %v1394_v18  ;;  %v1611_v34 = vsel %vm2610_vm14, 1.0, %v1394_v18  ;;  %v1616_v35 = vsel %vm2611_vm15, 1.0, %v1394_v18  ;;  %vm1619_vm7 = vcmp.eq.s32.totalorder %v1451_v1, %v1363_v20 }
  0x1c   : > { %2712 = vst [vmem:[#allocation15_spill] sm:$0xff] %v1489_v13  ;;  %v2720_v36 = vsel %vm1619_vm7, 4294967295, %v2719_v36  ;;  %vm1624_vm6 = vcmp.eq.s32.totalorder %v1459_v3, %v1363_v20  ;;  %vm1629_vm5 = vcmp.eq.s32.totalorder %v1462_v4, %v1363_v20  ;;  %vm1634_vm14 = vcmp.eq.s32.totalorder %v1465_v5, %v1363_v20 }
  0x1d   : > { %2713 = vst [vmem:[#allocation16_spill] sm:$0xff] %v1492_v14  ;;  %v2723_v37 = vsel %vm1624_vm6, 4294967295, %v2722_v37  ;;  %v2726_v38 = vsel %vm1629_vm5, 4294967295, %v2725_v38  ;;  %v2729_v39 = vsel %vm1634_vm14, 4294967295, %v2728_v39  ;;  %vm1639_vm15 = vcmp.eq.s32.totalorder %v1468_v6, %v1363_v20 }
  0x1e   : > { %2714 = vst [vmem:[#allocation17_spill] sm:$0xff] %v1495_v15  ;;  %v2732_v40 = vsel %vm1639_vm15, 4294967295, %v2731_v40  ;;  %vm1644_vm4 = vcmp.eq.s32.totalorder %v1471_v7, %v1363_v20  ;;  %vm1649_vm13 = vcmp.eq.s32.totalorder %v1474_v8, %v1363_v20  ;;  %vm1654_vm12 = vcmp.eq.s32.totalorder %v1477_v9, %v1363_v20 }
  0x1f   : > { %2715 = vst [vmem:[#allocation18_spill] sm:$0xff] %v1498_v16  ;;  %v2735_v41 = vsel %vm1644_vm4, 4294967295, %v2734_v41  ;;  %v2738_v42 = vsel %vm1649_vm13, 4294967295, %v2737_v42  ;;  %v2741_v43 = vsel %vm1654_vm12, 4294967295, %v2740_v43  ;;  %vm1659_vm3 = vcmp.eq.s32.totalorder %v1480_v10, %v1363_v20 }
  0x20   : > { %2716 = vst [vmem:[#allocation19_spill] sm:$0xff] %v1501_v17  ;;  %v2744_v44 = vsel %vm1659_vm3, 4294967295, %v2743_v44  ;;  %vm1664_vm2 = vcmp.eq.s32.totalorder %v1483_v11, %v1363_v20  ;;  %vm1669_vm11 = vcmp.eq.s32.totalorder %v1486_v12, %v1363_v20  ;;  %vm1674_vm10 = vcmp.eq.s32.totalorder %v1489_v13, %v1363_v20 }
  0x21   : > { %2717 = vst [vmem:[#allocation20_spill] sm:$0xff] %v1538_v19  ;;  %v2747_v45 = vsel %vm1664_vm2, 4294967295, %v2746_v45  ;;  %v2750_v46 = vsel %vm1669_vm11, 4294967295, %v2749_v46  ;;  %v2752_v47 = vmov 0  ;;  %vm1679_vm1 = vcmp.eq.s32.totalorder %v1492_v14, %v1363_v20 }
  0x22   : > { %2718 = vst [vmem:[#allocation21_spill] sm:$0xff] %v1546_v21  ;;  %v2753_v47 = vsel %vm1674_vm10, 4294967295, %v2752_v47  ;;  %v2755_v48 = vmov 0  ;;  %vm1684_vm0 = vcmp.eq.s32.totalorder %v1495_v15, %v1363_v20  ;;  %vm1689_vm9 = vcmp.eq.s32.totalorder %v1498_v16, %v1363_v20 }
  0x23   : > { %2721 = vst [vmem:[#allocation22_spill] sm:$0xff] %v2720_v36  ;;  %v2756_v48 = vsel %vm1679_vm1, 4294967295, %v2755_v48  ;;  %vm1694_vm8 = vcmp.eq.s32.totalorder %v1501_v17, %v1363_v20  ;;  %v1700_v52 = vsel %vm1619_vm7, 1.0, %v1394_v18  ;;  %v1704_v53 = vsel %vm1624_vm6, 1.0, %v1394_v18 }
  0x24   : > { %2724 = vst [vmem:[#allocation23_spill] sm:$0xff] %v2723_v37  ;;  %v1708_v54 = vsel %vm1629_vm5, 1.0, %v1394_v18  ;;  %v1712_v55 = vsel %vm1634_vm14, 1.0, %v1394_v18  ;;  %v1716_v56 = vsel %vm1639_vm15, 1.0, %v1394_v18  ;;  %v1720_v57 = vsel %vm1644_vm4, 1.0, %v1394_v18 }
  0x25   : > { %2727 = vst [vmem:[#allocation24_spill] sm:$0xff] %v2726_v38  ;;  %v1724_v58 = vsel %vm1649_vm13, 1.0, %v1394_v18  ;;  %v1728_v59 = vsel %vm1654_vm12, 1.0, %v1394_v18  ;;  %v1732_v60 = vsel %vm1659_vm3, 1.0, %v1394_v18  ;;  %v1736_v61 = vsel %vm1664_vm2, 1.0, %v1394_v18 }
  0x26   : > { %2730 = vst [vmem:[#allocation25_spill] sm:$0xff] %v2729_v39  ;;  %v1740_v62 = vsel %vm1669_vm11, 1.0, %v1394_v18  ;;  %v1744_v63 = vsel %vm1674_vm10, 1.0, %v1394_v18  ;;  %v1748_v0 = vsel %vm1679_vm1, 1.0, %v1394_v18  ;;  %v1752_v20 = vsel %vm1684_vm0, 1.0, %v1394_v18 }
  0x27   : > { %2733 = vst [vmem:[#allocation26_spill] sm:$0xff] %v2732_v40  ;;  %v1756_v9 = vsel %vm1689_vm9, 1.0, %v1394_v18  ;;  %v1760_v8 = vsel %vm1694_vm8, 1.0, %v1394_v18  ;;  %v1395_v17 = vmov (%p342_p4), 0.0  }
  0x28   : > { %2736 = vst [vmem:[#allocation27_spill] sm:$0xff] %v2735_v41 }
  0x29   : > { %2739 = vst [vmem:[#allocation28_spill] sm:$0xff] %v2738_v42 }
  0x2a   : > { %2742 = vst [vmem:[#allocation29_spill] sm:$0xff] %v2741_v43 }
  0x2b   : > { %2745 = vst [vmem:[#allocation30_spill] sm:$0xff] %v2744_v44  ;;  %347 = sbr.rel (!%p342_p4) target bundleno = 80 (0x50), region = 36 }
  0x2c   : > { %2748 = vst [vmem:[#allocation31_spill] sm:$0xff] %v2747_v45 }
  0x2d   : > { %2751 = vst [vmem:[#allocation32_spill] sm:$0xff] %v2750_v46 }
  0x2e   : > { %2754 = vst [vmem:[#allocation33_spill] sm:$0xff] %v2753_v47 }
  0x2f   : > { %2763 = vst [vmem:[#allocation34_spill] sm:$0xff] %v1700_v52 }
  0x30   : > { %348 = vst [vmem:[%s2604_s3] sm:$0xff] %v1395_v17 }
  0x31   : > { %349 = vst [vmem:[%s2604_s3 + $0x8] sm:$0xff] %v1395_v17 }
  0x32   : > { %350 = vst [vmem:[%s2604_s3 + $0x10] sm:$0xff] %v1395_v17 }
  0x33   : > { %351 = vst [vmem:[%s2604_s3 + $0x18] sm:$0xff] %v1395_v17 }
  0x34   : > { %352 = vst [vmem:[%s2604_s3 + $0x20] sm:$0xff] %v1395_v17 }
  0x35   : > { %353 = vst [vmem:[%s2604_s3 + $0x28] sm:$0xff] %v1395_v17 }
  0x36   : > { %354 = vst [vmem:[%s2604_s3 + $0x30] sm:$0xff] %v1395_v17 }
  0x37   : > { %355 = vst [vmem:[%s2604_s3 + $0x38] sm:$0xff] %v1395_v17 }
  0x38   : > { %356 = vst [vmem:[%s2604_s3 + $0x40] sm:$0xff] %v1395_v17 }
  0x39   : > { %357 = vst [vmem:[%s2604_s3 + $0x48] sm:$0xff] %v1395_v17 }
  0x3a   : > { %358 = vst [vmem:[%s2604_s3 + $0x50] sm:$0xff] %v1395_v17 }
  0x3b   : > { %359 = vst [vmem:[%s2604_s3 + $0x58] sm:$0xff] %v1395_v17 }
  0x3c   : > { %360 = vst [vmem:[%s2604_s3 + $0x60] sm:$0xff] %v1395_v17 }
  0x3d   : > { %361 = vst [vmem:[%s2604_s3 + $0x68] sm:$0xff] %v1395_v17 }
  0x3e   : > { %362 = vst [vmem:[%s2604_s3 + $0x70] sm:$0xff] %v1395_v17 }
  0x3f   : > { %363 = vst [vmem:[%s2604_s3 + $0x78] sm:$0xff] %v1395_v17 }
  0x40   : > { %364 = vst [vmem:[#allocation2 + $0x30] sm:$0xff] %v1395_v17 }
  0x41   : > { %365 = vst [vmem:[#allocation2] sm:$0xff] %v1395_v17 }
  0x42   : > { %366 = vst [vmem:[#allocation2 + $0x58] sm:$0xff] %v1395_v17 }
  0x43   : > { %367 = vst [vmem:[#allocation2 + $0x18] sm:$0xff] %v1395_v17 }
  0x44   : > { %368 = vst [vmem:[#allocation2 + $0x50] sm:$0xff] %v1395_v17 }
  0x45   : > { %369 = vst [vmem:[#allocation2 + $0x68] sm:$0xff] %v1395_v17 }
  0x46   : > { %370 = vst [vmem:[#allocation2 + $0x8] sm:$0xff] %v1395_v17 }
  0x47   : > { %371 = vst [vmem:[#allocation2 + $0x48] sm:$0xff] %v1395_v17 }
  0x48   : > { %372 = vst [vmem:[#allocation2 + $0x40] sm:$0xff] %v1395_v17 }
  0x49   : > { %373 = vst [vmem:[#allocation2 + $0x20] sm:$0xff] %v1395_v17 }
  0x4a   : > { %374 = vst [vmem:[#allocation2 + $0x10] sm:$0xff] %v1395_v17 }
  0x4b   : > { %375 = vst [vmem:[#allocation2 + $0x38] sm:$0xff] %v1395_v17 }
  0x4c   : > { %376 = vst [vmem:[#allocation2 + $0x60] sm:$0xff] %v1395_v17 }
  0x4d   : > { %377 = vst [vmem:[#allocation2 + $0x70] sm:$0xff] %v1395_v17 }
  0x4e   : > { %378 = vst [vmem:[#allocation2 + $0x78] sm:$0xff] %v1395_v17 }
  0x4f   : > { %379 = vst [vmem:[#allocation2 + $0x28] sm:$0xff] %v1395_v17 }
  0x50 PF: > { %p1189_p5 = scmp.ne.s32.totalorder %s1384_s18, 0 }
  0x52   : > { %382 = sbr.rel (%p1189_p5) target bundleno = 589 (0x24d), region = 40 }
  0x57   : > { %v385_v18 = vld [vmem:[%s2602_s1 + $0x10] sm:$0xff]  ;;  %v1819_v16 = vld [vmem:[%s2603_s2] ss:$0 sm:$0xff]  ;;  %v1827_v17 = vld [vmem:[%s2603_s2 + $0x1] ss:$0 sm:$0xff] }
  0x58   : > { %v383_v7 = vld [vmem:[%s2602_s1] sm:$0xff]  ;;  %v403_v6 = vmul.f32 %v1819_v16, %v385_v18  ;;  %v384_v5 = vld [vmem:[%s2602_s1 + $0x8] sm:$0xff]  ;;  %v453_v4 = vmul.f32 %v1827_v17, %v385_v18  ;;  %vm1207_vm6 = vmpackc.low %vm1694_vm8, %vm1689_vm9 }
  0x59   : > { %v401_v15 = vmul.f32 %v1819_v16, %v383_v7  ;;  %v451_v14 = vmul.f32 %v1827_v17, %v383_v7  ;;  %v402_v13 = vmul.f32 %v1819_v16, %v384_v5  ;;  %v452_v12 = vmul.f32 %v1827_v17, %v384_v5  ;;  %v387_v7 = vld [vmem:[%s2602_s1 + $0x20] sm:$0xff]  ;;  %vm1209_vm7 = vmpackc.low %vm1684_vm0, %vm1679_vm1 }
  0x5a   : > { %421 = vadd.xlane.f32.xlu2 %v403_v6  ;;  %v386_v6 = vld [vmem:[%s2602_s1 + $0x18] sm:$0xff]  ;;  %vm1213_vm1 = vmpackc.low %vm1664_vm2, %vm1659_vm3 }
  0x5b   : > { %417 = vadd.xlane.f32.xlu0 %v401_v15  ;;  %467 = vadd.xlane.f32.xlu1 %v451_v14  ;;  %v405_v14 = vmul.f32 %v1819_v16, %v387_v7  ;;  %v404_v15 = vmul.f32 %v1819_v16, %v386_v6  ;;  %v454_v18 = vmul.f32 %v1827_v17, %v386_v6  ;;  %v390_v6 = vld [vmem:[%s2602_s1 + $0x38] sm:$0xff] }
  0x62   : > { %471 = vadd.xlane.f32.xlu2 %v453_v4  ;;  %v388_v4 = vld [vmem:[%s2602_s1 + $0x28] sm:$0xff] }
  0x63   : > { %419 = vadd.xlane.f32.xlu0 %v402_v13  ;;  %469 = vadd.xlane.f32.xlu1 %v452_v12  ;;  %v456_v5 = vmul.f32 %v1827_v17, %v388_v4  ;;  %v455_v12 = vmul.f32 %v1827_v17, %v387_v7  ;;  %v406_v13 = vmul.f32 %v1819_v16, %v388_v4  ;;  %v391_v7 = vld [vmem:[%s2602_s1 + $0x40] sm:$0xff] }
  0x64   : > { %v459_v4 = vmul.f32 %v1827_v17, %v391_v7 }
  0x6a   : > { %425 = vadd.xlane.f32.xlu2 %v405_v14  ;;  %v389_v14 = vld [vmem:[%s2602_s1 + $0x30] sm:$0xff] }
  0x6b   : > { %423 = vadd.xlane.f32.xlu0 %v404_v15  ;;  %473 = vadd.xlane.f32.xlu1 %v454_v18  ;;  %v408_v15 = vmul.f32 %v1819_v16, %v390_v6  ;;  %v407_v18 = vmul.f32 %v1819_v16, %v389_v14  ;;  %v457_v3 = vmul.f32 %v1827_v17, %v389_v14 }
  0x72   : > { %477 = vadd.xlane.f32.xlu2 %v456_v5  ;;  %v458_v5 = vmul.f32 %v1827_v17, %v390_v6  ;;  %v394_v6 = vld [vmem:[%s2602_s1 + $0x58] sm:$0xff] }
  0x73   : > { %475 = vadd.xlane.f32.xlu0 %v455_v12  ;;  %427 = vadd.xlane.f32.xlu1 %v406_v13  ;;  %v409_v12 = vmul.f32 %v1819_v16, %v391_v7  ;;  %v393_v13 = vld [vmem:[%s2602_s1 + $0x50] sm:$0xff]  ;;  %v462_v7 = vmul.f32 %v1827_v17, %v394_v6 }
  0x74   : > { %v411_v14 = vmul.f32 %v1819_v16, %v393_v13 }
  0x7a   : > { %431 = vadd.xlane.f32.xlu2 %v408_v15 }
  0x7b   : > { %429 = vadd.xlane.f32.xlu0 %v407_v18  ;;  %479 = vadd.xlane.f32.xlu1 %v457_v3  ;;  %v392_v3 = vld [vmem:[%s2602_s1 + $0x48] sm:$0xff] }
  0x7c   : > { %v410_v15 = vmul.f32 %v1819_v16, %v392_v3  ;;  %v460_v18 = vmul.f32 %v1827_v17, %v392_v3  ;;  %v395_v3 = vld [vmem:[%s2602_s1 + $0x60] sm:$0xff] }
  0x82   : > { %483 = vadd.xlane.f32.xlu2 %v459_v4  ;;  %v461_v4 = vmul.f32 %v1827_v17, %v393_v13  ;;  %v397_v13 = vld [vmem:[%s2602_s1 + $0x70] sm:$0xff] }
  0x83   : > { %481 = vadd.xlane.f32.xlu0 %v458_v5  ;;  %433 = vadd.xlane.f32.xlu1 %v409_v12  ;;  %v412_v5 = vmul.f32 %v1819_v16, %v394_v6  ;;  %v396_v12 = vld [vmem:[%s2602_s1 + $0x68] sm:$0xff]  ;;  %v465_v6 = vmul.f32 %v1827_v17, %v397_v13 }
  0x8a   : > { %437 = vadd.xlane.f32.xlu2 %v411_v14  ;;  %v414_v14 = vmul.f32 %v1819_v16, %v396_v12 }
  0x8b   : > { %435 = vadd.xlane.f32.xlu0 %v410_v15  ;;  %485 = vadd.xlane.f32.xlu1 %v460_v18  ;;  %v413_v15 = vmul.f32 %v1819_v16, %v395_v3  ;;  %v463_v18 = vmul.f32 %v1827_v17, %v395_v3 }
  0x92   : > { %489 = vadd.xlane.f32.xlu2 %v462_v7  ;;  %v464_v7 = vmul.f32 %v1827_v17, %v396_v12 }
  0x93   : > { %487 = vadd.xlane.f32.xlu0 %v461_v4  ;;  %439 = vadd.xlane.f32.xlu1 %v412_v5  ;;  %v415_v4 = vmul.f32 %v1819_v16, %v397_v13  ;;  %v398_v5 = vld [vmem:[%s2602_s1 + $0x78] sm:$0xff] }
  0x94   : > { %v416_v3 = vmul.f32 %v1819_v16, %v398_v5 }
  0x9a   : > { %443 = vadd.xlane.f32.xlu2 %v414_v14  ;;  %v466_v14 = vmul.f32 %v1827_v17, %v398_v5 }
  0x9b   : > { %441 = vadd.xlane.f32.xlu0 %v413_v15  ;;  %491 = vadd.xlane.f32.xlu1 %v463_v18 }
  0xa2   : > { %495 = vadd.xlane.f32.xlu2 %v465_v6 }
  0xa3   : > { %493 = vadd.xlane.f32.xlu0 %v464_v7  ;;  %445 = vadd.xlane.f32.xlu1 %v415_v4 }
  0xab   : > { %447 = vadd.xlane.f32.xlu0 %v416_v3  ;;  %497 = vadd.xlane.f32.xlu1 %v466_v14 }
  0xcd   : > { %v422_v15 = vpop.xlane.xlu2 %421 }
  0xce   : > { %v418_v18 = vpop.xlane.xlu0 %417  ;;  %v468_v1 = vpop.xlane.xlu1 %467  ;;  %v501_v46 = vmul.f32 %v1551_v22, %v422_v15 }
  0xcf   : > { %v515_v5 = vmul.f32 %v1700_v52, %v468_v1  ;;  %v499_v3 = vmul.f32 %v1538_v19, %v418_v18 }
  0xd1   : > { %v531_v42 = vadd.f32 %v515_v5, %v499_v3 }
  0xd5   : > { %v472_v11 = vpop.xlane.xlu2 %471 }
  0xd6   : > { %v420_v12 = vpop.xlane.xlu0 %419  ;;  %v470_v2 = vpop.xlane.xlu1 %469  ;;  %v517_v45 = vmul.f32 %v1708_v54, %v472_v11 }
  0xd7   : > { %v516_v16 = vmul.f32 %v1704_v53, %v470_v2  ;;  %v500_v17 = vmul.f32 %v1546_v21, %v420_v12 }
  0xd8   : > { %v533_v21 = vadd.f32 %v517_v45, %v501_v46 }
  0xd9   : > { %v532_v40 = vadd.f32 %v516_v16, %v500_v17 }
  0xdb   : > { %v547_v2 = vadd.f32 %v532_v40, %v531_v42 }
  0xdd   : > { %v426_v13 = vpop.xlane.xlu2 %425  ;;  %v548_v16 = vadd.f32 %v547_v2, %v533_v21 }
  0xde   : > { %v424_v6 = vpop.xlane.xlu0 %423  ;;  %v474_v7 = vpop.xlane.xlu1 %473  ;;  %v503_v18 = vmul.f32 %v1561_v24, %v426_v13 }
  0xdf   : > { %v518_v44 = vmul.f32 %v1712_v55, %v474_v7  ;;  %v502_v47 = vmul.f32 %v1556_v23, %v424_v6 }
  0xe1   : > { %v534_v1 = vadd.f32 %v518_v44, %v502_v47 }
  0xe3   : > { %v549_v3 = vadd.f32 %v548_v16, %v534_v1 }
  0xe5   : > { %v478_v4 = vpop.xlane.xlu2 %477 }
  0xe6   : > { %v476_v10 = vpop.xlane.xlu0 %475  ;;  %v428_v37 = vpop.xlane.xlu1 %427  ;;  %v520_v11 = vmul.f32 %v1720_v57, %v478_v4 }
  0xe7   : > { %v519_v12 = vmul.f32 %v1716_v56, %v476_v10  ;;  %v504_v7 = vmul.f32 %v1566_v25, %v428_v37 }
  0xe9   : > { %v535_v5 = vadd.f32 %v519_v12, %v503_v18  ;;  %v536_v44 = vadd.f32 %v520_v11, %v504_v7 }
  0xeb   : > { %v550_v42 = vadd.f32 %v549_v3, %v535_v5 }
  0xed   : > { %v432_v36 = vpop.xlane.xlu2 %431  ;;  %v551_v13 = vadd.f32 %v550_v42, %v536_v44 }
  0xee   : > { %v430_v39 = vpop.xlane.xlu0 %429  ;;  %v480_v38 = vpop.xlane.xlu1 %479  ;;  %v506_v21 = vmul.f32 %v1576_v27, %v432_v36 }
  0xef   : > { %v521_v6 = vmul.f32 %v1724_v58, %v480_v38  ;;  %v505_v40 = vmul.f32 %v1571_v26, %v430_v39 }
  0xf1   : > { %v537_v45 = vadd.f32 %v521_v6, %v505_v40 }
  0xf3   : > { %v552_v12 = vadd.f32 %v551_v13, %v537_v45 }
  0xf5   : > { %v484_v14 = vpop.xlane.xlu2 %483 }
  0xf6   : > { %v482_v41 = vpop.xlane.xlu0 %481  ;;  %v434_v43 = vpop.xlane.xlu1 %433  ;;  %v523_v4 = vmul.f32 %v1732_v60, %v484_v14 }
  0xf7   : > { %v522_v10 = vmul.f32 %v1728_v59, %v482_v41  ;;  %v507_v37 = vmul.f32 %v1581_v28, %v434_v43 }
  0xf9   : > { %v538_v2 = vadd.f32 %v522_v10, %v506_v21  ;;  %v539_v16 = vadd.f32 %v523_v4, %v507_v37 }
  0xfb   : > { %v553_v1 = vadd.f32 %v552_v12, %v538_v2 }
  0xfd   : > { %v438_v19 = vpop.xlane.xlu2 %437  ;;  %v554_v7 = vadd.f32 %v553_v1, %v539_v16 }
  0xfe   : > { %v436_v52 = vpop.xlane.xlu0 %435  ;;  %v486_v17 = vpop.xlane.xlu1 %485  ;;  %v509_v11 = vmul.f32 %v1591_v30, %v438_v19 }
  0xff   : > { %v524_v38 = vmul.f32 %v1736_v61, %v486_v17  ;;  %v508_v39 = vmul.f32 %v1586_v29, %v436_v52 }
 0x101   : > { %v540_v5 = vadd.f32 %v524_v38, %v508_v39 }
 0x103   : > { %v555_v40 = vadd.f32 %v554_v7, %v540_v5  ;;  %v1396_v7 = vmov 1.0|1.0  }
 0x104   : > { %1276 = vmatpush.bf16.xpose.msk.msra.mxu3 %vm1207_vm6, %v1396_v7  ;;  %1208 = vmatpush.bf16.xpose.msk.msra.mxu1 %vm1207_vm6, %v1396_v7  ;;  %vm1211_vm6 = vmpackc.low %vm1674_vm10, %vm1669_vm11 }
 0x105   : > { %v490_v46 = vpop.xlane.xlu2 %489 }
 0x106   : > { %v488_v47 = vpop.xlane.xlu0 %487  ;;  %v440_v15 = vpop.xlane.xlu1 %439  ;;  %v526_v14 = vmul.f32 %v1744_v63, %v490_v46 }
 0x107   : > { %v525_v41 = vmul.f32 %v1740_v62, %v488_v47  ;;  %v510_v43 = vmul.f32 %v1596_v31, %v440_v15 }
 0x109   : > { %v541_v6 = vadd.f32 %v525_v41, %v509_v11  ;;  %v542_v47 = vadd.f32 %v526_v14, %v510_v43 }
 0x10b   : > { %v556_v42 = vadd.f32 %v555_v40, %v541_v6 }
 0x10c   : > { %1277 = vmatpush.bf16.xpose.msk.msra.mxu3 %vm1209_vm7, %v1396_v7  ;;  %1210 = vmatpush.bf16.xpose.msk.msra.mxu1 %vm1209_vm7, %v1396_v7 }
 0x10d   : > { %v444_v3 = vpop.xlane.xlu2 %443  ;;  %v557_v2 = vadd.f32 %v556_v42, %v542_v47 }
 0x10e   : > { %v442_v18 = vpop.xlane.xlu0 %441  ;;  %v492_v36 = vpop.xlane.xlu1 %491  ;;  %v512_v21 = vmul.f32 %v1606_v33, %v444_v3 }
 0x10f   : > { %v527_v17 = vmul.f32 %v1748_v0, %v492_v36  ;;  %v511_v52 = vmul.f32 %v1601_v32, %v442_v18 }
 0x111   : > { %v543_v19 = vadd.f32 %v527_v17, %v511_v52 }
 0x113   : > { %v558_v4 = vadd.f32 %v557_v2, %v543_v19 }
 0x114   : > { %1278 = vmatpush.bf16.xpose.msk.msra.mxu3 %vm1211_vm6, %v1396_v7  ;;  %1212 = vmatpush.bf16.xpose.msk.msra.mxu1 %vm1211_vm6, %v1396_v7  ;;  %vm1215_vm6 = vmpackc.low %vm1654_vm12, %vm1649_vm13 }
 0x115   : > { %v496_v13 = vpop.xlane.xlu2 %495  ;;  %vm1217_vm13 = vmpackc.low %vm1644_vm4, %vm1639_vm15 }
 0x116   : > { %v494_v10 = vpop.xlane.xlu0 %493  ;;  %v446_v44 = vpop.xlane.xlu1 %445  ;;  %v529_v46 = vmul.f32 %v1756_v9, %v496_v13 }
 0x117   : > { %v528_v45 = vmul.f32 %v1752_v20, %v494_v10  ;;  %v513_v15 = vmul.f32 %v1611_v34, %v446_v44 }
 0x119   : > { %v544_v12 = vadd.f32 %v528_v45, %v512_v21  ;;  %v545_v41 = vadd.f32 %v529_v46, %v513_v15  ;;  %v2793_v45 = vld [vmem:[#allocation7_spill] sm:$0xff]  ;;  %v2812_v46 = vld [vmem:[#allocation10_spill] sm:$0xff] }
 0x11a   : > { %v2814_v15 = vld [vmem:[#allocation11_spill] sm:$0xff] }
 0x11b   : > { %v559_v37 = vadd.f32 %v558_v4, %v544_v12 }
 0x11c   : > { %1279 = vmatpush.bf16.xpose.msk.msra.mxu3 %vm1213_vm1, %v1396_v7  ;;  %1214 = vmatpush.bf16.xpose.msk.msra.mxu1 %vm1213_vm1, %v1396_v7 }
 0x11d   : > { %v560_v16 = vadd.f32 %v559_v37, %v545_v41 }
 0x11e   : > { %v448_v38 = vpop.xlane.xlu0 %447  ;;  %v498_v39 = vpop.xlane.xlu1 %497 }
 0x11f   : > { %v514_v1 = vmul.f32 %v1616_v35, %v448_v38  ;;  %v530_v18 = vmul.f32 %v1760_v8, %v498_v39 }
 0x121   : > { %v546_v5 = vadd.f32 %v530_v18, %v514_v1  ;;  %v717_v18 = vld [vmem:[#allocation2] sm:$0xff] }
 0x123   : > { %v561_v3 = vadd.f32 %v560_v16, %v546_v5 }
 0x124   : > { %1280 = vmatpush.bf16.xpose.msk.msra.mxu3 %vm1215_vm6, %v1396_v7  ;;  %1216 = vmatpush.bf16.xpose.msk.msra.mxu1 %vm1215_vm6, %v1396_v7 }
 0x125   : > { %v562_v36 = vrot.slane %v561_v3, 4 }
 0x127   : > { %v563_v11 = vadd.f32 %v562_v36, %v561_v3 }
 0x129   : > { %v564_v6 = vrot.slane %v563_v11, 2 }
 0x12b   : > { %v565_v40 = vadd.f32 %v564_v6, %v563_v11  ;;  %v2776_v6 = vld [vmem:[#allocation23_spill] sm:$0xff] }
 0x12c   : > { %1281 = vmatpush.bf16.xpose.msk.msra.mxu3 %vm1217_vm13, %v1396_v7  ;;  %1218 = vmatpush.bf16.xpose.msk.msra.mxu1 %vm1217_vm13, %v1396_v7  ;;  %vm2777_vm13 = vnez %v2776_v6 }
 0x12d   : > { %v566_v14 = vrot.slane %v565_v40, 1 }
 0x12f   : > { %v567_v43 = vadd.f32 %v566_v14, %v565_v40  ;;  %v2779_v14 = vld [vmem:[#allocation4_spill] sm:$0xff] }
 0x131   : > { %v1190_v17 = vmul.f32 -1.442695, %v567_v43  ;;  %v2781_v43 = vld [vmem:[#allocation13_spill] sm:$0xff] }
 0x133   : > { %1366 = vpow2.f32 %v1190_v17 }
 0x139   : > { %v1367_v10 = vpop.eup %1366 }
 0x13a   : > { %v571_v44 = vadd.f32 1.0, %v1367_v10  ;;  %v2787_v10 = vld [vmem:[#allocation14_spill] sm:$0xff] }
 0x13c   : > { %1368 = vrcp.f32 %v571_v44  ;;  %v583_v2 = vand.u32 2147483648, %v571_v44  ;;  %v581_v4 = vand.u32 2147483647, %v571_v44  ;;  %vm577_vm3 = vweird.f32 %v571_v44 }
 0x13e   : > { %v584_v38 = vor.u32 1.1754944e-38, %v583_v2  ;;  %vm582_vm1 = vcmp.eq.f32.partialorder %v581_v4, 8.507059e+37  ;;  %v2802_v2 = vld [vmem:[#allocation9_spill] sm:$0xff]  ;;  %v2810_v4 = vld [vmem:[#allocation19_spill] sm:$0xff] }
 0x142   : > { %v1369_v21 = vpop.eup %1368 }
 0x143   : > { %v573_v19 = vmul.f32 %v1369_v21, %v571_v44  ;;  %vm578_vm7 = vweird.f32 %v1369_v21  ;;  %v2789_v44 = vld [vmem:[#allocation15_spill] sm:$0xff] }
 0x144   : > { %vm579_vm2 = vmor %vm577_vm3, %vm578_vm7 }
 0x145   : > { %v574_v13 = vsub.f32 1.0, %v573_v19  ;;  %v2797_v19 = vld [vmem:[#allocation17_spill] sm:$0xff] }
 0x147   : > { %v575_v12 = vmul.f32 %v1369_v21, %v574_v13 }
 0x149   : > { %v576_v37 = vadd.f32 %v1369_v21, %v575_v12  ;;  %v2808_v12 = vld [vmem:[#allocation18_spill] sm:$0xff] }
 0x14b   : > { %v580_v39 = vsel %vm579_vm2, %v1369_v21, %v576_v37  ;;  %vm1219_vm2 = vmpackc.low %vm1634_vm14, %vm1629_vm5  ;;  %v2795_v21 = vld [vmem:[#allocation16_spill] sm:$0xff] }
 0x14c   : > { %v1965_v1 = vsel %vm582_vm1, %v584_v38, %v580_v39  ;;  %1282 = vmatpush.bf16.xpose.msk.msra.mxu3 %vm1219_vm2, %v1396_v7  ;;  %1220 = vmatpush.bf16.xpose.msk.msra.mxu1 %vm1219_vm2, %v1396_v7  ;;  %vm2782_vm1 = vcmp.eq.s32.totalorder %v2781_v43, %v2779_v14  ;;  %v724_v38 = vld [vmem:[#allocation2 + $0x40] sm:$0xff] }
 0x14d   : > { %v618_v41 = vmul.f32 %v1760_v8, %v1965_v1  ;;  %v617_v5 = vmul.f32 %v1756_v9, %v1965_v1  ;;  %v616_v3 = vmul.f32 %v1752_v20, %v1965_v1  ;;  %v615_v11 = vmul.f32 %v1748_v0, %v1965_v1  ;;  %v2774_v20 = vld [vmem:[#allocation22_spill] sm:$0xff] }
 0x14e   : > { %v614_v9 = vmul.f32 %v1744_v63, %v1965_v1  ;;  %vm2775_vm3 = vnez %v2774_v20  ;;  %v613_v40 = vmul.f32 %v1740_v62, %v1965_v1  ;;  %v612_v0 = vmul.f32 %v1736_v61, %v1965_v1  ;;  %v2778_v63 = vld [vmem:[#allocation12_spill] sm:$0xff]  ;;  %v2783_v62 = vld [vmem:[#allocation3_spill] sm:$0xff]  ;;  %v2785_v61 = vld [vmem:[#allocation5_spill] sm:$0xff] }
 0x14f   : > { %619 = vmatpush.xpose.msra.mxu0 %v618_v41  ;;  %1260 = vmatpush.xpose.msra.mxu2 %v618_v41  ;;  %vm1221_vm7 = vmpackc.low %vm2777_vm13, %vm2775_vm3  ;;  %vm2780_vm6 = vcmp.eq.s32.totalorder %v2778_v63, %v2779_v14  ;;  %v611_v17 = vmul.f32 %v1732_v60, %v1965_v1  ;;  %vm2784_vm3 = vcmp.eq.s32.totalorder %v2783_v62, %v2779_v14  ;;  %v726_v20 = vld [vmem:[#allocation2 + $0x10] sm:$0xff] }
 0x150   : > { %vm1231_vm2 = vmpackc.low %vm2782_vm1, %vm2780_vm6  ;;  %vm2786_vm13 = vcmp.eq.s32.totalorder %v2785_v61, %v2779_v14  ;;  %v610_v52 = vmul.f32 %v1728_v59, %v1965_v1  ;;  %v609_v42 = vmul.f32 %v1724_v58, %v1965_v1  ;;  %v608_v60 = vmul.f32 %v1720_v57, %v1965_v1  ;;  %v2791_v58 = vld [vmem:[#allocation6_spill] sm:$0xff] }
 0x151   : > { %vm2788_vm6 = vcmp.eq.s32.totalorder %v2787_v10, %v2779_v14  ;;  %vm2790_vm1 = vcmp.eq.s32.totalorder %v2789_v44, %v2779_v14  ;;  %v607_v59 = vmul.f32 %v1716_v56, %v1965_v1  ;;  %v606_v57 = vmul.f32 %v1712_v55, %v1965_v1  ;;  %v2799_v55 = vld [vmem:[#allocation34_spill] sm:$0xff] }
 0x152   : > { %v605_v47 = vmul.f32 %v1708_v54, %v1965_v1  ;;  %v604_v56 = vmul.f32 %v1704_v53, %v1965_v1  ;;  %v603_v13 = vmul.f32 %v2799_v55, %v1965_v1  ;;  %v2800_v54 = vld [vmem:[#allocation8_spill] sm:$0xff]  ;;  %v1397_v53 = vmov 1.0  }
 0x153   : > { %620 = vmatpush.xpose.msra.mxu0 %v617_v5  ;;  %1261 = vmatpush.xpose.msra.mxu2 %v617_v5  ;;  %vm2817_vm14 = vcmp.eq.s32.totalorder %v2791_v58, %v2779_v14  ;;  %v725_v5 = vld [vmem:[#allocation2 + $0x20] sm:$0xff] }
 0x154   : > { %1283 = vmatpush.bf16.xpose.msk.msra.mxu3 %vm1221_vm7, %v1396_v7  ;;  %1222 = vmatpush.bf16.xpose.msk.msra.mxu1 %vm1221_vm7, %v1396_v7  ;;  %vm1223_vm7 = vmpackc.low %vm2786_vm13, %vm2784_vm3  ;;  %vm2792_vm3 = vcmp.eq.s32.totalorder %v2791_v58, %v2779_v14  ;;  %vm2794_vm13 = vcmp.eq.s32.totalorder %v2793_v45, %v2779_v14 }
 0x157   : > { %621 = vmatpush.xpose.msra.mxu0 %v616_v3  ;;  %1262 = vmatpush.xpose.msra.mxu2 %v616_v3 }
 0x15b   : > { %622 = vmatpush.xpose.msra.mxu0 %v615_v11  ;;  %1263 = vmatpush.xpose.msra.mxu2 %v615_v11  ;;  %v718_v11 = vld [vmem:[#allocation2 + $0x58] sm:$0xff] }
 0x15c   : > { %1232 = vmatmul.msk.bf16.vlgmr.msra.gmra.mxu3 %vm1231_vm2, %v1396_v7  ;;  %1224 = vmatmul.msk.bf16.vlgmr.msra.gmra.mxu1 %vm1223_vm7, %v1396_v7  ;;  %vm1233_vm2 = vmpackc.low %vm2790_vm1, %vm2788_vm6  ;;  %vm2796_vm6 = vcmp.eq.s32.totalorder %v2795_v21, %v2779_v14  ;;  %vm2798_vm1 = vcmp.eq.s32.totalorder %v2797_v19, %v2779_v14 }
 0x15d   : > { %vm1225_vm7 = vmpackc.low %vm2794_vm13, %vm2792_vm3  ;;  %vm2801_vm3 = vcmp.eq.s32.totalorder %v2800_v54, %v2779_v14  ;;  %vm2803_vm13 = vcmp.eq.s32.totalorder %v2802_v2, %v2779_v14 }
 0x15f   : > { %623 = vmatpush.xpose.msra.mxu0 %v614_v9  ;;  %1264 = vmatpush.xpose.msra.mxu2 %v614_v9 }
 0x163   : > { %624 = vmatpush.xpose.msra.mxu0 %v613_v40  ;;  %1265 = vmatpush.xpose.msra.mxu2 %v613_v40 }
 0x167   : > { %625 = vmatpush.xpose.msra.mxu0 %v612_v0  ;;  %1266 = vmatpush.xpose.msra.mxu2 %v612_v0 }
 0x16b   : > { %626 = vmatpush.xpose.msra.mxu0 %v611_v17  ;;  %1267 = vmatpush.xpose.msra.mxu2 %v611_v17 }
 0x16c   : > { %1234 = vmatmul.msk.bf16.gmra.mxu3 %vm1233_vm2, %v1396_v7  ;;  %1226 = vmatmul.msk.bf16.gmra.mxu1 %vm1225_vm7, %v1396_v7  ;;  %vm1235_vm2 = vmpackc.low %vm2798_vm1, %vm2796_vm6  ;;  %vm2804_vm6 = vcmp.eq.s32.totalorder %v2778_v63, %v2779_v14  ;;  %vm2805_vm1 = vcmp.eq.s32.totalorder %v2783_v62, %v2779_v14  ;;  %v719_v63 = vld [vmem:[#allocation2 + $0x18] sm:$0xff] }
 0x16d   : > { %vm1227_vm7 = vmpackc.low %vm2803_vm13, %vm2801_vm3  ;;  %vm2807_vm3 = vcmp.eq.s32.totalorder %v2785_v61, %v2779_v14  ;;  %vm2809_vm13 = vcmp.eq.s32.totalorder %v2808_v12, %v2779_v14 }
 0x16f   : > { %627 = vmatpush.xpose.msra.mxu0 %v610_v52  ;;  %1268 = vmatpush.xpose.msra.mxu2 %v610_v52  ;;  %v587_v52 = vld [vmem:[%s2604_s3] sm:$0xff] }
 0x173   : > { %628 = vmatpush.xpose.msra.mxu0 %v609_v42  ;;  %1269 = vmatpush.xpose.msra.mxu2 %v609_v42 }
 0x177   : > { %629 = vmatpush.xpose.msra.mxu0 %v608_v60  ;;  %1270 = vmatpush.xpose.msra.mxu2 %v608_v60 }
 0x17b   : > { %630 = vmatpush.xpose.msra.mxu0 %v607_v59  ;;  %1271 = vmatpush.xpose.msra.mxu2 %v607_v59  ;;  %v728_v59 = vld [vmem:[#allocation2 + $0x60] sm:$0xff] }
 0x17c   : > { %1236 = vmatmul.msk.bf16.gmra.mxu3 %vm1235_vm2, %v1396_v7  ;;  %1228 = vmatmul.msk.bf16.gmra.mxu1 %vm1227_vm7, %v1396_v7  ;;  %vm2806_vm2 = vcmp.eq.s32.totalorder %v2781_v43, %v2779_v14  ;;  %vm2811_vm7 = vcmp.eq.s32.totalorder %v2810_v4, %v2779_v14  ;;  %v727_v43 = vld [vmem:[#allocation2 + $0x38] sm:$0xff] }
 0x17d   : > { %vm1237_vm5 = vmpackc.low %vm2811_vm7, %vm2809_vm13  ;;  %vm2819_vm13 = vcmp.eq.s32.totalorder %v2793_v45, %v2779_v14  ;;  %vm2820_vm7 = vcmp.eq.s32.totalorder %v2795_v21, %v2779_v14  ;;  %v588_v21 = vld [vmem:[%s2604_s3 + $0x8] sm:$0xff] }
 0x17f   : > { %631 = vmatpush.xpose.msra.mxu0 %v606_v57  ;;  %1272 = vmatpush.xpose.msra.mxu2 %v606_v57 }
 0x183   : > { %632 = vmatpush.xpose.msra.mxu0 %v605_v47  ;;  %1273 = vmatpush.xpose.msra.mxu2 %v605_v47  ;;  %v595_v47 = vld [vmem:[%s2604_s3 + $0x40] sm:$0xff] }
 0x187   : > { %633 = vmatpush.xpose.msra.mxu0 %v604_v56  ;;  %1274 = vmatpush.xpose.msra.mxu2 %v604_v56 }
 0x18b   : > { %634 = vmatpush.xpose.msra.mxu0 %v603_v13  ;;  %1275 = vmatpush.xpose.msra.mxu2 %v603_v13 }
 0x18c   : > { %1238 = vmatmul.msk.bf16.gmra.mxu3 %vm1237_vm5, %v1396_v7  ;;  %vm2818_vm5 = vcmp.eq.s32.totalorder %v2789_v44, %v2779_v14 }
 0x18e   : > { %1199 = vmatmul.msk.f32.vlgmr.msra.gmra.mxu2 %vm2804_vm6, %v1397_v53  ;;  %1191 = vmatmul.msk.f32.vlgmr.msra.gmra.mxu0 %vm2805_vm1, %v1397_v53  ;;  %vm2813_vm6 = vcmp.eq.s32.totalorder %v2812_v46, %v2779_v14  ;;  %vm2815_vm1 = vcmp.eq.s32.totalorder %v2814_v15, %v2779_v14 }
 0x196   : > { %1200 = vmatmul.msk.f32.gmra.mxu2 %vm2806_vm2, %v1397_v53  ;;  %1192 = vmatmul.msk.f32.gmra.mxu0 %vm2807_vm3, %v1397_v53  ;;  %vm1229_vm2 = vmpackc.low %vm2815_vm1, %vm2813_vm6  ;;  %vm2816_vm3 = vcmp.eq.s32.totalorder %v2787_v10, %v2779_v14  ;;  %vm2821_vm6 = vcmp.eq.s32.totalorder %v2800_v54, %v2779_v14  ;;  %vm2822_vm1 = vcmp.eq.s32.totalorder %v2797_v19, %v2779_v14  ;;  %v720_v10 = vld [vmem:[#allocation2 + $0x50] sm:$0xff]  ;;  %v721_v54 = vld [vmem:[#allocation2 + $0x68] sm:$0xff] }
 0x197   : > { %1230 = vmatmul.msk.bf16.gmra.mxu1 %vm1229_vm2, %v1396_v7  ;;  %vm2824_vm2 = vcmp.eq.s32.totalorder %v2808_v12, %v2779_v14  ;;  %v716_v7 = vld [vmem:[#allocation2 + $0x30] sm:$0xff] }
 0x19e   : > { %1201 = vmatmul.msk.f32.gmra.mxu2 %vm2816_vm3, %v1397_v53  ;;  %1193 = vmatmul.msk.f32.gmra.mxu0 %vm2817_vm14, %v1397_v53  ;;  %vm2823_vm14 = vcmp.eq.s32.totalorder %v2802_v2, %v2779_v14  ;;  %vm2825_vm3 = vcmp.eq.s32.totalorder %v2812_v46, %v2779_v14 }
 0x1a6   : > { %1202 = vmatmul.msk.f32.gmra.mxu2 %vm2818_vm5, %v1397_v53  ;;  %1194 = vmatmul.msk.f32.gmra.mxu0 %vm2819_vm13, %v1397_v53  ;;  %vm2826_vm5 = vcmp.eq.s32.totalorder %v2810_v4, %v2779_v14  ;;  %vm2827_vm13 = vcmp.eq.s32.totalorder %v2814_v15, %v2779_v14  ;;  %v596_v15 = vld [vmem:[%s2604_s3 + $0x48] sm:$0xff] }
 0x1ae   : > { %1203 = vmatmul.msk.f32.gmra.mxu2 %vm2820_vm7, %v1397_v53  ;;  %1195 = vmatmul.msk.f32.gmra.mxu0 %vm2821_vm6, %v1397_v53 }
 0x1b6   : > { %1204 = vmatmul.msk.f32.gmra.mxu2 %vm2822_vm1, %v1397_v53  ;;  %1196 = vmatmul.msk.f32.gmra.mxu0 %vm2823_vm14, %v1397_v53 }
 0x1be   : > { %1205 = vmatmul.msk.f32.gmra.mxu2 %vm2824_vm2, %v1397_v53  ;;  %1197 = vmatmul.msk.f32.gmra.mxu0 %vm2825_vm3, %v1397_v53 }
 0x1c6   : > { %1206 = vmatmul.msk.f32.gmra.mxu2 %vm2826_vm5, %v1397_v53  ;;  %1198 = vmatmul.msk.f32.gmra.mxu0 %vm2827_vm13, %v1397_v53  ;;  %v729_v53 = vld [vmem:[#allocation2 + $0x70] sm:$0xff] }
 0x1d9   : > { %v757_v37 = vpop.f32.mrf.mxu1 }
 0x1da   : > { %v797_v39 = vadd.f32 %v757_v37, %v716_v7  ;;  %v589_v37 = vld [vmem:[%s2604_s3 + $0x10] sm:$0xff] }
 0x1dc   : > { %813 = vst [vmem:[#allocation2 + $0x30] sm:$0xff] %v797_v39 }
 0x1df   : > { %v777_v1 = vpop.f32.mrf.mxu3 }
 0x1e0   : > { %v805_v41 = vadd.f32 %v777_v1, %v724_v38 }
 0x1e1   : > { %v759_v16 = vpop.f32.mrf.mxu1 }
 0x1e2   : > { %821 = vst [vmem:[#allocation2 + $0x40] sm:$0xff] %v805_v41  ;;  %v798_v8 = vadd.f32 %v759_v16, %v717_v18  ;;  %v722_v41 = vld [vmem:[#allocation2 + $0x8] sm:$0xff]  ;;  %v730_v16 = vld [vmem:[#allocation2 + $0x78] sm:$0xff] }
 0x1e4   : > { %814 = vst [vmem:[#allocation2] sm:$0xff] %v798_v8 }
 0x1e7   : > { %v779_v3 = vpop.f32.mrf.mxu3 }
 0x1e8   : > { %v806_v36 = vadd.f32 %v779_v3, %v725_v5 }
 0x1e9   : > { %v762_v9 = vpop.f32.mrf.mxu1 }
 0x1ea   : > { %822 = vst [vmem:[#allocation2 + $0x20] sm:$0xff] %v806_v36  ;;  %v799_v40 = vadd.f32 %v762_v9, %v718_v11  ;;  %v597_v36 = vld [vmem:[%s2604_s3 + $0x50] sm:$0xff]  ;;  %v590_v9 = vld [vmem:[%s2604_s3 + $0x18] sm:$0xff] }
 0x1ec   : > { %815 = vst [vmem:[#allocation2 + $0x58] sm:$0xff] %v799_v40 }
 0x1ef   : > { %v782_v6 = vpop.f32.mrf.mxu3 }
 0x1f0   : > { %v807_v0 = vadd.f32 %v782_v6, %v726_v20 }
 0x1f1   : > { %v764_v14 = vpop.f32.mrf.mxu1 }
 0x1f2   : > { %823 = vst [vmem:[#allocation2 + $0x10] sm:$0xff] %v807_v0  ;;  %v800_v62 = vadd.f32 %v764_v14, %v719_v63  ;;  %v723_v0 = vld [vmem:[#allocation2 + $0x48] sm:$0xff] }
 0x1f3   : > { %v731_v14 = vld [vmem:[#allocation2 + $0x28] sm:$0xff] }
 0x1f4   : > { %816 = vst [vmem:[#allocation2 + $0x18] sm:$0xff] %v800_v62 }
 0x1f7   : > { %v784_v17 = vpop.f32.mrf.mxu3 }
 0x1f8   : > { %v808_v61 = vadd.f32 %v784_v17, %v727_v43 }
 0x1f9   : > { %v767_v44 = vpop.f32.mrf.mxu1 }
 0x1fa   : > { %824 = vst [vmem:[#allocation2 + $0x38] sm:$0xff] %v808_v61  ;;  %v801_v45 = vadd.f32 %v767_v44, %v720_v10  ;;  %v598_v61 = vld [vmem:[%s2604_s3 + $0x58] sm:$0xff] }
 0x1fc   : > { %817 = vst [vmem:[#allocation2 + $0x50] sm:$0xff] %v801_v45 }
 0x1ff   : > { %v787_v58 = vpop.f32.mrf.mxu3 }
 0x200   : > { %v809_v57 = vadd.f32 %v787_v58, %v728_v59  ;;  %v1398_v59 = vmov 0.0   ;;  %v599_v58 = vld [vmem:[%s2604_s3 + $0x60] sm:$0xff] }
 0x201   : > { %v769_v2 = vpop.f32.mrf.mxu1  ;;  %829 = vst [vmem:[%s2606_s5] sm:$0x1] %v1398_v59 }
 0x202   : > { %825 = vst [vmem:[#allocation2 + $0x60] sm:$0xff] %v809_v57  ;;  %v802_v4 = vadd.f32 %v769_v2, %v721_v54  ;;  %v592_v57 = vld [vmem:[%s2604_s3 + $0x28] sm:$0xff] }
 0x204   : > { %818 = vst [vmem:[#allocation2 + $0x68] sm:$0xff] %v802_v4 }
 0x207   : > { %v789_v12 = vpop.f32.mrf.mxu3 }
 0x208   : > { %v810_v46 = vadd.f32 %v789_v12, %v729_v53  ;;  %v601_v12 = vld [vmem:[%s2604_s3 + $0x70] sm:$0xff] }
 0x20a   : > { %826 = vst [vmem:[#allocation2 + $0x70] sm:$0xff] %v810_v46  ;;  %v594_v46 = vld [vmem:[%s2604_s3 + $0x38] sm:$0xff] }
 0x20b   : > { %v636_v42 = vpop.f32.mrf.mxu0 }
 0x20c   : > { %v684_v60 = vadd.f32 %v636_v42, %v587_v52  ;;  %v591_v42 = vld [vmem:[%s2604_s3 + $0x20] sm:$0xff] }
 0x20e   : > { %700 = vst [vmem:[%s2604_s3] sm:$0xff] %v684_v60 }
 0x20f   : > { %v792_v5 = vpop.f32.mrf.mxu3 }
 0x210   : > { %v811_v8 = vadd.f32 %v792_v5, %v730_v16 }
 0x211   : > { %v660_v56 = vpop.f32.mrf.mxu2 }
 0x212   : > { %v692_v19 = vadd.f32 %v660_v56, %v595_v47  ;;  %827 = vst [vmem:[#allocation2 + $0x78] sm:$0xff] %v811_v8 }
 0x213   : > { %v639_v55 = vpop.f32.mrf.mxu0 }
 0x214   : > { %708 = vst [vmem:[%s2604_s3 + $0x40] sm:$0xff] %v692_v19  ;;  %v685_v13 = vadd.f32 %v639_v55, %v588_v21  ;;  %v772_v18 = vpop.f32.mrf.mxu1  ;;  %v600_v19 = vld [vmem:[%s2604_s3 + $0x68] sm:$0xff] }
 0x215   : > { %v803_v3 = vadd.f32 %v772_v18, %v722_v41 }
 0x216   : > { %701 = vst [vmem:[%s2604_s3 + $0x8] sm:$0xff] %v685_v13  ;;  %v593_v13 = vld [vmem:[%s2604_s3 + $0x30] sm:$0xff] }
 0x217   : > { %819 = vst [vmem:[#allocation2 + $0x8] sm:$0xff] %v803_v3  ;;  %v794_v43 = vpop.f32.mrf.mxu3 }
 0x218   : > { %v812_v62 = vadd.f32 %v794_v43, %v731_v14 }
 0x219   : > { %v663_v7 = vpop.f32.mrf.mxu2 }
 0x21a   : > { %v693_v38 = vadd.f32 %v663_v7, %v596_v15  ;;  %828 = vst [vmem:[#allocation2 + $0x28] sm:$0xff] %v812_v62 }
 0x21b   : > { %v642_v39 = vpop.f32.mrf.mxu0 }
 0x21c   : > { %709 = vst [vmem:[%s2604_s3 + $0x48] sm:$0xff] %v693_v38  ;;  %v686_v1 = vadd.f32 %v642_v39, %v589_v37  ;;  %v774_v63 = vpop.f32.mrf.mxu1  ;;  %v602_v38 = vld [vmem:[%s2604_s3 + $0x78] sm:$0xff] }
 0x21d   : > { %v804_v17 = vadd.f32 %v774_v63, %v723_v0 }
 0x21e   : > { %702 = vst [vmem:[%s2604_s3 + $0x10] sm:$0xff] %v686_v1 }
 0x21f   : > { %820 = vst [vmem:[#allocation2 + $0x48] sm:$0xff] %v804_v17 }
 0x221   : > { %v666_v11 = vpop.f32.mrf.mxu2 }
 0x222   : > { %v694_v20 = vadd.f32 %v666_v11, %v597_v36 }
 0x223   : > { %v645_v6 = vpop.f32.mrf.mxu0 }
 0x224   : > { %710 = vst [vmem:[%s2604_s3 + $0x50] sm:$0xff] %v694_v20  ;;  %v687_v40 = vadd.f32 %v645_v6, %v590_v9 }
 0x226   : > { %703 = vst [vmem:[%s2604_s3 + $0x18] sm:$0xff] %v687_v40 }
 0x229   : > { %v669_v52 = vpop.f32.mrf.mxu2 }
 0x22a   : > { %v695_v60 = vadd.f32 %v669_v52, %v598_v61 }
 0x22b   : > { %v648_v10 = vpop.f32.mrf.mxu0 }
 0x22c   : > { %711 = vst [vmem:[%s2604_s3 + $0x58] sm:$0xff] %v695_v60  ;;  %v688_v44 = vadd.f32 %v648_v10, %v591_v42 }
 0x22e   : > { %704 = vst [vmem:[%s2604_s3 + $0x20] sm:$0xff] %v688_v44 }
 0x231   : > { %v672_v45 = vpop.f32.mrf.mxu2 }
 0x232   : > { %v696_v47 = vadd.f32 %v672_v45, %v599_v58 }
 0x233   : > { %v651_v56 = vpop.f32.mrf.mxu0 }
 0x234   : > { %712 = vst [vmem:[%s2604_s3 + $0x60] sm:$0xff] %v696_v47  ;;  %v689_v21 = vadd.f32 %v651_v56, %v592_v57 }
 0x236   : > { %705 = vst [vmem:[%s2604_s3 + $0x28] sm:$0xff] %v689_v21 }
 0x239   : > { %v675_v55 = vpop.f32.mrf.mxu2 }
 0x23a   : > { %v697_v54 = vadd.f32 %v675_v55, %v600_v19 }
 0x23b   : > { %v654_v2 = vpop.f32.mrf.mxu0 }
 0x23c   : > { %713 = vst [vmem:[%s2604_s3 + $0x68] sm:$0xff] %v697_v54  ;;  %v690_v53 = vadd.f32 %v654_v2, %v593_v13 }
 0x23e   : > { %706 = vst [vmem:[%s2604_s3 + $0x30] sm:$0xff] %v690_v53 }
 0x241   : > { %v678_v4 = vpop.f32.mrf.mxu2 }
 0x242   : > { %v698_v15 = vadd.f32 %v678_v4, %v601_v12 }
 0x243   : > { %v657_v7 = vpop.f32.mrf.mxu0 }
 0x244   : > { %714 = vst [vmem:[%s2604_s3 + $0x70] sm:$0xff] %v698_v15  ;;  %v691_v37 = vadd.f32 %v657_v7, %v594_v46 }
 0x246   : > { %707 = vst [vmem:[%s2604_s3 + $0x38] sm:$0xff] %v691_v37 }
 0x249   : > { %v681_v39 = vpop.f32.mrf.mxu2 }
 0x24a   : > { %v699_v1 = vadd.f32 %v681_v39, %v602_v38 }
 0x24c   : > { %715 = vst [vmem:[%s2604_s3 + $0x78] sm:$0xff] %v699_v1 }
 0x24d PF: > { %p1239_p6 = scmp.ne.s32.totalorder %s1384_s18, 1 }
 0x24f   : > { %833 = sbr.rel (%p1239_p6) target bundleno = 1037 (0x40d), region = 44 }
 0x254   : > { %v2224_v41 = vld [vmem:[%s2604_s3] sm:$0xff]  ;;  %v2230_v18 = vld [vmem:[%s2604_s3 + $0x8] sm:$0xff]  ;;  %v2236_v16 = vld [vmem:[%s2604_s3 + $0x10] sm:$0xff]  ;;  %v1399_v0 = vmov 1.0  }
 0x255   : > { %869 = vxpose.xlu0.b32.start [1/16] %v2224_v41, 128  ;;  %v2242_v5 = vld [vmem:[%s2604_s3 + $0x18] sm:$0xff]  ;;  %v2248_v3 = vld [vmem:[%s2604_s3 + $0x20] sm:$0xff]  ;;  %v2254_v8 = vld [vmem:[%s2604_s3 + $0x28] sm:$0xff]  ;;  %1240 = vmatpush.msk.msra.mxu0 %vm1694_vm8, %v1399_v0 }
 0x256   : > { %v2260_v36 = vld [vmem:[%s2604_s3 + $0x30] sm:$0xff]  ;;  %v2266_v11 = vld [vmem:[%s2604_s3 + $0x38] sm:$0xff]  ;;  %v2272_v9 = vld [vmem:[%s2604_s3 + $0x40] sm:$0xff]  ;;  %1284 = vmatpush.msk.msra.mxu1 %vm1694_vm8, %v1399_v0  ;;  %1285 = vmatpush.msk.msra.mxu2 %vm1694_vm8, %v1399_v0 }
 0x257   : > { %v2278_v20 = vld [vmem:[%s2604_s3 + $0x48] sm:$0xff]  ;;  %v2284_v6 = vld [vmem:[%s2604_s3 + $0x50] sm:$0xff]  ;;  %v2290_v40 = vld [vmem:[%s2604_s3 + $0x58] sm:$0xff]  ;;  %1286 = vmatpush.msk.msra.mxu3 %vm1694_vm8, %v1399_v0  ;;  %1241 = vmatpush.msk.msra.mxu0 %vm1689_vm9, %v1399_v0  ;;  %vm2828_vm8 = vnez %v2756_v48 }
 0x258   : > { %1287 = vmatpush.msk.msra.mxu1 %vm1689_vm9, %v1399_v0  ;;  %1288 = vmatpush.msk.msra.mxu2 %vm1689_vm9, %v1399_v0  ;;  %v2320_v51 = vld [vmem:[%s2604_s3 + $0x60] sm:$0xff]  ;;  %v2371_v48 = vld [vmem:[%s2604_s3 + $0x68] sm:$0xff]  ;;  %v2833_v14 = vld [vmem:[#allocation30_spill] sm:$0xff] }
 0x259   : > { %1289 = vmatpush.msk.msra.mxu3 %vm1689_vm9, %v1399_v0  ;;  %1242 = vmatpush.msk.msra.mxu0 %vm1684_vm0, %v1399_v0  ;;  %v2831_v63 = vld [vmem:[#allocation31_spill] sm:$0xff]  ;;  %vm2834_vm9 = vnez %v2833_v14  ;;  %v2836_v17 = vld [vmem:[#allocation28_spill] sm:$0xff]  ;;  %v2422_v62 = vld [vmem:[%s2604_s3 + $0x70] sm:$0xff] }
 0x25a   : > { %1290 = vmatpush.msk.msra.mxu1 %vm1684_vm0, %v1399_v0  ;;  %1291 = vmatpush.msk.msra.mxu2 %vm1684_vm0, %v1399_v0  ;;  %v2840_v42 = vld [vmem:[#allocation25_spill] sm:$0xff]  ;;  %v2842_v60 = vld [vmem:[#allocation24_spill] sm:$0xff]  ;;  %v2473_v10 = vld [vmem:[%s2604_s3 + $0x78] sm:$0xff] }
 0x25b   : > { %1292 = vmatpush.msk.msra.mxu3 %vm1684_vm0, %v1399_v0  ;;  %1243 = vmatpush.msk.msra.mxu0 %vm2828_vm8, %v1399_v0  ;;  %vm2832_vm0 = vnez %v2831_v63  ;;  %v2844_v44 = vld [vmem:[#allocation23_spill] sm:$0xff]  ;;  %v2846_v59 = vld [vmem:[#allocation22_spill] sm:$0xff]  ;;  %v853_v58 = vld [vmem:[#allocation2 + $0x30] sm:$0xff] }
 0x25c   : > { %1293 = vmatpush.msk.msra.mxu1 %vm2828_vm8, %v1399_v0  ;;  %1294 = vmatpush.msk.msra.mxu2 %vm2828_vm8, %v1399_v0  ;;  %vm2845_vm7 = vnez %v2844_v44  ;;  %v854_v21 = vld [vmem:[#allocation2] sm:$0xff]  ;;  %v855_v2 = vld [vmem:[#allocation2 + $0x58] sm:$0xff]  ;;  %v857_v1 = vld [vmem:[#allocation2 + $0x50] sm:$0xff] }
 0x25d   : > { %870 = vxpose.xlu0.b32.cont [2/16] %v2230_v18, 128  ;;  %1244 = vmatpush.msk.msra.mxu0 %vm1674_vm10, %v1399_v0  ;;  %v856_v15 = vld [vmem:[#allocation2 + $0x18] sm:$0xff]  ;;  %v858_v50 = vld [vmem:[#allocation2 + $0x68] sm:$0xff] }
 0x25e   : > { %1296 = vmatpush.msk.msra.mxu1 %vm1674_vm10, %v1399_v0  ;;  %1297 = vmatpush.msk.msra.mxu2 %vm1674_vm10, %v1399_v0  ;;  %v859_v43 = vld [vmem:[#allocation2 + $0x8] sm:$0xff] }
 0x25f   : > { %1295 = vmatpush.msk.msra.mxu3 %vm2828_vm8, %v1399_v0  ;;  %1245 = vmatpush.msk.msra.mxu0 %vm1669_vm11, %v1399_v0 }
 0x260   : > { %1299 = vmatpush.msk.msra.mxu1 %vm1669_vm11, %v1399_v0  ;;  %1300 = vmatpush.msk.msra.mxu2 %vm1669_vm11, %v1399_v0 }
 0x261   : > { %1298 = vmatpush.msk.msra.mxu3 %vm1674_vm10, %v1399_v0  ;;  %1246 = vmatpush.msk.msra.mxu0 %vm2832_vm0, %v1399_v0  ;;  %vm2837_vm10 = vnez %v2836_v17 }
 0x262   : > { %1302 = vmatpush.msk.msra.mxu1 %vm2832_vm0, %v1399_v0  ;;  %1303 = vmatpush.msk.msra.mxu2 %vm2832_vm0, %v1399_v0 }
 0x263   : > { %1301 = vmatpush.msk.msra.mxu3 %vm1669_vm11, %v1399_v0  ;;  %1247 = vmatpush.msk.msra.mxu0 %vm2834_vm9, %v1399_v0  ;;  %vm2841_vm11 = vnez %v2840_v42  ;;  %v860_v42 = vld [vmem:[#allocation2 + $0x48] sm:$0xff] }
 0x264   : > { %1305 = vmatpush.msk.msra.mxu1 %vm2834_vm9, %v1399_v0  ;;  %1306 = vmatpush.msk.msra.mxu2 %vm2834_vm9, %v1399_v0 }
 0x265   : > { %871 = vxpose.xlu0.b32.cont [3/16] %v2236_v16, 128  ;;  %1248 = vmatpush.msk.msra.mxu0 %vm1654_vm12, %v1399_v0 }
 0x266   : > { %1308 = vmatpush.msk.msra.mxu1 %vm1654_vm12, %v1399_v0  ;;  %1309 = vmatpush.msk.msra.mxu2 %vm1654_vm12, %v1399_v0 }
 0x267   : > { %1304 = vmatpush.msk.msra.mxu3 %vm2832_vm0, %v1399_v0  ;;  %1249 = vmatpush.msk.msra.mxu0 %vm2837_vm10, %v1399_v0 }
 0x268   : > { %1311 = vmatpush.msk.msra.mxu1 %vm2837_vm10, %v1399_v0  ;;  %1312 = vmatpush.msk.msra.mxu2 %vm2837_vm10, %v1399_v0 }
 0x269   : > { %1307 = vmatpush.msk.msra.mxu3 %vm2834_vm9, %v1399_v0  ;;  %1250 = vmatpush.msk.msra.mxu0 %vm1644_vm4, %v1399_v0 }
 0x26a   : > { %1314 = vmatpush.msk.msra.mxu1 %vm1644_vm4, %v1399_v0  ;;  %1315 = vmatpush.msk.msra.mxu2 %vm1644_vm4, %v1399_v0 }
 0x26b   : > { %1310 = vmatpush.msk.msra.mxu3 %vm1654_vm12, %v1399_v0  ;;  %1251 = vmatpush.msk.msra.mxu0 %vm1639_vm15, %v1399_v0  ;;  %vm2843_vm12 = vnez %v2842_v60 }
 0x26c   : > { %1317 = vmatpush.msk.msra.mxu1 %vm1639_vm15, %v1399_v0  ;;  %1318 = vmatpush.msk.msra.mxu2 %vm1639_vm15, %v1399_v0 }
 0x26d   : > { %872 = vxpose.xlu0.b32.cont [4/16] %v2242_v5, 128  ;;  %1252 = vmatpush.msk.msra.mxu0 %vm2841_vm11, %v1399_v0 }
 0x26e   : > { %1320 = vmatpush.msk.msra.mxu1 %vm2841_vm11, %v1399_v0  ;;  %1321 = vmatpush.msk.msra.mxu2 %vm2841_vm11, %v1399_v0 }
 0x26f   : > { %1313 = vmatpush.msk.msra.mxu3 %vm2837_vm10, %v1399_v0  ;;  %1253 = vmatpush.msk.msra.mxu0 %vm2843_vm12, %v1399_v0 }
 0x270   : > { %1323 = vmatpush.msk.msra.mxu1 %vm2843_vm12, %v1399_v0  ;;  %1324 = vmatpush.msk.msra.mxu2 %vm2843_vm12, %v1399_v0 }
 0x271   : > { %1316 = vmatpush.msk.msra.mxu3 %vm1644_vm4, %v1399_v0  ;;  %1254 = vmatpush.msk.msra.mxu0 %vm2845_vm7, %v1399_v0  ;;  %vm2847_vm4 = vnez %v2846_v59 }
 0x272   : > { %1326 = vmatpush.msk.msra.mxu1 %vm2845_vm7, %v1399_v0  ;;  %1327 = vmatpush.msk.msra.mxu2 %vm2845_vm7, %v1399_v0 }
 0x273   : > { %1319 = vmatpush.msk.msra.mxu3 %vm1639_vm15, %v1399_v0  ;;  %1255 = vmatpush.msk.msra.mxu0 %vm2847_vm4, %v1399_v0 }
 0x274   : > { %1329 = vmatpush.msk.msra.mxu1 %vm2847_vm4, %v1399_v0  ;;  %1330 = vmatpush.msk.msra.mxu2 %vm2847_vm4, %v1399_v0 }
 0x275   : > { %873 = vxpose.xlu0.b32.cont [5/16] %v2248_v3, 128  ;;  %1322 = vmatpush.msk.msra.mxu3 %vm2841_vm11, %v1399_v0 }
 0x277   : > { %1325 = vmatpush.msk.msra.mxu3 %vm2843_vm12, %v1399_v0 }
 0x279   : > { %1328 = vmatpush.msk.msra.mxu3 %vm2845_vm7, %v1399_v0 }
 0x27b   : > { %1331 = vmatpush.msk.msra.mxu3 %vm2847_vm4, %v1399_v0 }
 0x27d   : > { %874 = vxpose.xlu0.b32.cont [6/16] %v2254_v8, 128 }
 0x285   : > { %875 = vxpose.xlu0.b32.cont [7/16] %v2260_v36, 128 }
 0x28d   : > { %876 = vxpose.xlu0.b32.cont [8/16] %v2266_v11, 128 }
 0x295   : > { %877 = vxpose.xlu0.b32.cont [9/16] %v2272_v9, 128 }
 0x29d   : > { %878 = vxpose.xlu0.b32.cont [10/16] %v2278_v20, 128 }
 0x2a5   : > { %879 = vxpose.xlu0.b32.cont [11/16] %v2284_v6, 128 }
 0x2ad   : > { %880 = vxpose.xlu0.b32.cont [12/16] %v2290_v40, 128 }
 0x2b5   : > { %881 = vxpose.xlu0.b32.cont [13/16] %v2320_v51, 128 }
 0x2bd   : > { %882 = vxpose.xlu0.b32.cont [14/16] %v2371_v48, 128 }
 0x2c5   : > { %883 = vxpose.xlu0.b32.cont [15/16] %v2422_v62, 128 }
 0x2cd   : > { %884 = vxpose.xlu0.b32.end [16/16] %v2473_v10, 128 }
 0x2f9   : > { %v885_v45 = vpop.trf.xlu0 }
 0x2fa   : > { %v901_v57 = vadd.f32 %v885_v45, %v2224_v41 }
 0x2fc   : > { %v917_v47 = vmul.f32 %v901_v57, %v853_v58  ;;  %v861_v58 = vld [vmem:[#allocation2 + $0x40] sm:$0xff] }
 0x2fe   : > { %v933_v56 = vmul.f32 0.5, %v917_v47 }
 0x300   : > { %949 = vst [vmem:[%s2605_s4] sm:$0xff] %v933_v56  ;;  %997 = vmatmul.f32.vlgmr.msra.gmra.mxu0 %v933_v56  ;;  %v862_v56 = vld [vmem:[#allocation2 + $0x20] sm:$0xff] }
 0x301   : > { %v886_v19 = vpop.trf.xlu0 }
 0x302   : > { %v902_v55 = vadd.f32 %v886_v19, %v2230_v18 }
 0x304   : > { %v918_v13 = vmul.f32 %v902_v55, %v854_v21 }
 0x306   : > { %v934_v54 = vmul.f32 0.5, %v918_v13  ;;  %v863_v13 = vld [vmem:[#allocation2 + $0x10] sm:$0xff] }
 0x308   : > { %950 = vst [vmem:[%s2605_s4 + $0x8] sm:$0xff] %v934_v54  ;;  %1000 = vmatmul.f32.gmra.mxu0 %v934_v54 }
 0x309   : > { %v887_v53 = vpop.trf.xlu0 }
 0x30a   : > { %v903_v12 = vadd.f32 %v887_v53, %v2236_v16 }
 0x30c   : > { %v919_v4 = vmul.f32 %v903_v12, %v855_v2  ;;  %v864_v12 = vld [vmem:[#allocation2 + $0x38] sm:$0xff] }
 0x30e   : > { %v935_v46 = vmul.f32 0.5, %v919_v4 }
 0x310   : > { %951 = vst [vmem:[%s2605_s4 + $0x10] sm:$0xff] %v935_v46  ;;  %1003 = vmatmul.f32.gmra.mxu0 %v935_v46 }
 0x311   : > { %v888_v7 = vpop.trf.xlu0 }
 0x312   : > { %v904_v37 = vadd.f32 %v888_v7, %v2242_v5  ;;  %v865_v7 = vld [vmem:[#allocation2 + $0x60] sm:$0xff] }
 0x314   : > { %v920_v38 = vmul.f32 %v904_v37, %v856_v15 }
 0x316   : > { %v936_v39 = vmul.f32 0.5, %v920_v38 }
 0x318   : > { %952 = vst [vmem:[%s2605_s4 + $0x18] sm:$0xff] %v936_v39  ;;  %1006 = vmatmul.f32.gmra.mxu0 %v936_v39 }
 0x319   : > { %v889_v41 = vpop.trf.xlu0 }
 0x31a   : > { %v905_v18 = vadd.f32 %v889_v41, %v2248_v3 }
 0x31c   : > { %v921_v16 = vmul.f32 %v905_v18, %v857_v1  ;;  %v866_v1 = vld [vmem:[#allocation2 + $0x70] sm:$0xff] }
 0x31e   : > { %v937_v0 = vmul.f32 0.5, %v921_v16 }
 0x320   : > { %953 = vst [vmem:[%s2605_s4 + $0x20] sm:$0xff] %v937_v0  ;;  %1009 = vmatmul.f32.vlgmr.msra.gmra.mxu1 %v937_v0  ;;  %v867_v0 = vld [vmem:[#allocation2 + $0x78] sm:$0xff] }
 0x321   : > { %v890_v5 = vpop.trf.xlu0 }
 0x322   : > { %v906_v49 = vadd.f32 %v890_v5, %v2254_v8 }
 0x324   : > { %v922_v63 = vmul.f32 %v906_v49, %v858_v50 }
 0x326   : > { %v938_v14 = vmul.f32 0.5, %v922_v63  ;;  %v868_v63 = vld [vmem:[#allocation2 + $0x28] sm:$0xff] }
 0x328   : > { %954 = vst [vmem:[%s2605_s4 + $0x28] sm:$0xff] %v938_v14  ;;  %1012 = vmatmul.f32.gmra.mxu1 %v938_v14 }
 0x329   : > { %v891_v3 = vpop.trf.xlu0 }
 0x32a   : > { %v907_v17 = vadd.f32 %v891_v3, %v2260_v36 }
 0x32c   : > { %v923_v61 = vmul.f32 %v907_v17, %v859_v43 }
 0x32e   : > { %v939_v52 = vmul.f32 0.5, %v923_v61 }
 0x330   : > { %955 = vst [vmem:[%s2605_s4 + $0x30] sm:$0xff] %v939_v52  ;;  %1015 = vmatmul.f32.gmra.mxu1 %v939_v52 }
 0x331   : > { %v892_v8 = vpop.trf.xlu0 }
 0x332   : > { %v908_v60 = vadd.f32 %v892_v8, %v2266_v11 }
 0x334   : > { %v924_v44 = vmul.f32 %v908_v60, %v860_v42 }
 0x336   : > { %v940_v59 = vmul.f32 0.5, %v924_v44 }
 0x338   : > { %956 = vst [vmem:[%s2605_s4 + $0x38] sm:$0xff] %v940_v59  ;;  %1018 = vmatmul.f32.gmra.mxu1 %v940_v59  ;;  %v2848_v59 = vld [vmem:[#allocation21_spill] sm:$0xff] }
 0x339   : > { %v893_v36 = vpop.trf.xlu0 }
 0x33a   : > { %v909_v45 = vadd.f32 %v893_v36, %v2272_v9 }
 0x33c   : > { %v925_v57 = vmul.f32 %v909_v45, %v861_v58  ;;  %v2849_v45 = vld [vmem:[#allocation20_spill] sm:$0xff] }
 0x33e   : > { %v941_v47 = vmul.f32 0.5, %v925_v57 }
 0x340   : > { %957 = vst [vmem:[%s2605_s4 + $0x40] sm:$0xff] %v941_v47  ;;  %1021 = vmatmul.f32.vlgmr.msra.gmra.mxu2 %v941_v47 }
 0x341   : > { %v894_v11 = vpop.trf.xlu0 }
 0x342   : > { %v910_v21 = vadd.f32 %v894_v11, %v2278_v20 }
 0x344   : > { %v926_v19 = vmul.f32 %v910_v21, %v862_v56 }
 0x346   : > { %v942_v55 = vmul.f32 0.5, %v926_v19 }
 0x348   : > { %958 = vst [vmem:[%s2605_s4 + $0x48] sm:$0xff] %v942_v55  ;;  %1024 = vmatmul.f32.gmra.mxu2 %v942_v55 }
 0x349   : > { %v895_v9 = vpop.trf.xlu0 }
 0x34a   : > { %v911_v54 = vadd.f32 %v895_v9, %v2284_v6 }
 0x34c   : > { %v927_v2 = vmul.f32 %v911_v54, %v863_v13 }
 0x34e   : > { %v943_v53 = vmul.f32 0.5, %v927_v2 }
 0x350   : > { %959 = vst [vmem:[%s2605_s4 + $0x50] sm:$0xff] %v943_v53  ;;  %1027 = vmatmul.f32.gmra.mxu2 %v943_v53 }
 0x351   : > { %v896_v20 = vpop.trf.xlu0 }
 0x352   : > { %v912_v4 = vadd.f32 %v896_v20, %v2290_v40 }
 0x354   : > { %v928_v46 = vmul.f32 %v912_v4, %v864_v12 }
 0x356   : > { %v944_v15 = vmul.f32 0.5, %v928_v46 }
 0x358   : > { %960 = vst [vmem:[%s2605_s4 + $0x58] sm:$0xff] %v944_v15  ;;  %1030 = vmatmul.f32.gmra.mxu2 %v944_v15 }
 0x359   : > { %v897_v6 = vpop.trf.xlu0 }
 0x35a   : > { %v913_v37 = vadd.f32 %v897_v6, %v2320_v51 }
 0x35c   : > { %v929_v38 = vmul.f32 %v913_v37, %v865_v7 }
 0x35e   : > { %v945_v39 = vmul.f32 0.5, %v929_v38 }
 0x360   : > { %961 = vst [vmem:[%s2605_s4 + $0x60] sm:$0xff] %v945_v39  ;;  %1033 = vmatmul.f32.vlgmr.msra.gmra.mxu3 %v945_v39 }
 0x361   : > { %v898_v40 = vpop.trf.xlu0 }
 0x362   : > { %v914_v41 = vadd.f32 %v898_v40, %v2371_v48 }
 0x364   : > { %v930_v18 = vmul.f32 %v914_v41, %v866_v1 }
 0x366   : > { %v946_v16 = vmul.f32 0.5, %v930_v18 }
 0x368   : > { %962 = vst [vmem:[%s2605_s4 + $0x68] sm:$0xff] %v946_v16  ;;  %1036 = vmatmul.f32.gmra.mxu3 %v946_v16 }
 0x369   : > { %v899_v51 = vpop.trf.xlu0 }
 0x36a   : > { %v915_v50 = vadd.f32 %v899_v51, %v2422_v62 }
 0x36c   : > { %v931_v5 = vmul.f32 %v915_v50, %v867_v0 }
 0x36e   : > { %v947_v49 = vmul.f32 0.5, %v931_v5 }
 0x370   : > { %963 = vst [vmem:[%s2605_s4 + $0x70] sm:$0xff] %v947_v49  ;;  %1039 = vmatmul.f32.gmra.mxu3 %v947_v49 }
 0x371   : > { %v900_v48 = vpop.trf.xlu0 }
 0x372   : > { %v916_v14 = vadd.f32 %v900_v48, %v2473_v10 }
 0x374   : > { %v932_v43 = vmul.f32 %v916_v14, %v868_v63 }
 0x376   : > { %v948_v3 = vmul.f32 0.5, %v932_v43 }
 0x378   : > { %964 = vst [vmem:[%s2605_s4 + $0x78] sm:$0xff] %v948_v3  ;;  %1042 = vmatmul.f32.gmra.mxu3 %v948_v3 }
 0x37d   : > { %v998_v17 = vpop.f32.mrf.mxu0 }
 0x37e   : > { %v1046_v10 = vmul.f32 %v2849_v45, %v998_v17 }
 0x385   : > { %v1001_v61 = vpop.f32.mrf.mxu0 }
 0x386   : > { %v1047_v58 = vmul.f32 %v2848_v59, %v1001_v61 }
 0x388   : > { %v1062_v47 = vadd.f32 %v1047_v58, %v1046_v10 }
 0x38d   : > { %v1004_v8 = vpop.f32.mrf.mxu0 }
 0x38e   : > { %v1048_v57 = vmul.f32 %v1551_v22, %v1004_v8 }
 0x390   : > { %v1063_v21 = vadd.f32 %v1062_v47, %v1048_v57 }
 0x395   : > { %v1007_v36 = vpop.f32.mrf.mxu0 }
 0x396   : > { %v1049_v56 = vmul.f32 %v1556_v23, %v1007_v36 }
 0x398   : > { %v1064_v13 = vadd.f32 %v1063_v21, %v1049_v56 }
 0x39d   : > { %v1010_v62 = vpop.f32.mrf.mxu1 }
 0x39e   : > { %v1050_v19 = vmul.f32 %v1561_v24, %v1010_v62 }
 0x3a0   : > { %v1065_v2 = vadd.f32 %v1064_v13, %v1050_v19 }
 0x3a5   : > { %v1013_v42 = vpop.f32.mrf.mxu1 }
 0x3a6   : > { %v1051_v9 = vmul.f32 %v1566_v25, %v1013_v42 }
 0x3a8   : > { %v1066_v12 = vadd.f32 %v1065_v2, %v1051_v9 }
 0x3ad   : > { %v1016_v44 = vpop.f32.mrf.mxu1 }
 0x3ae   : > { %v1052_v53 = vmul.f32 %v1571_v26, %v1016_v44 }
 0x3b0   : > { %v1067_v22 = vadd.f32 %v1066_v12, %v1052_v53 }
 0x3b5   : > { %v1019_v54 = vpop.f32.mrf.mxu1 }
 0x3b6   : > { %v1053_v20 = vmul.f32 %v1576_v27, %v1019_v54 }
 0x3b8   : > { %v1068_v23 = vadd.f32 %v1067_v22, %v1053_v20 }
 0x3c3   : > { %v1022_v52 = vpop.f32.mrf.mxu2 }
 0x3c4   : > { %v1054_v46 = vmul.f32 %v1581_v28, %v1022_v52 }
 0x3c6   : > { %v1069_v24 = vadd.f32 %v1068_v23, %v1054_v46 }
 0x3cb   : > { %v1025_v60 = vpop.f32.mrf.mxu2 }
 0x3cc   : > { %v1055_v15 = vmul.f32 %v1586_v29, %v1025_v60 }
 0x3ce   : > { %v1070_v37 = vadd.f32 %v1069_v24, %v1055_v15 }
 0x3d3   : > { %v1028_v55 = vpop.f32.mrf.mxu2 }
 0x3d4   : > { %v1056_v6 = vmul.f32 %v1591_v30, %v1028_v55 }
 0x3d6   : > { %v1071_v39 = vadd.f32 %v1070_v37, %v1056_v6 }
 0x3db   : > { %v1031_v7 = vpop.f32.mrf.mxu2 }
 0x3dc   : > { %v1057_v25 = vmul.f32 %v1596_v31, %v1031_v7 }
 0x3de   : > { %v1072_v1 = vadd.f32 %v1071_v39, %v1057_v25 }
 0x3e3   : > { %v1034_v11 = vpop.f32.mrf.mxu3 }
 0x3e4   : > { %v1058_v26 = vmul.f32 %v1601_v32, %v1034_v11 }
 0x3e6   : > { %v1073_v40 = vadd.f32 %v1072_v1, %v1058_v26 }
 0x3eb   : > { %v1037_v4 = vpop.f32.mrf.mxu3 }
 0x3ec   : > { %v1059_v27 = vmul.f32 %v1606_v33, %v1037_v4 }
 0x3ee   : > { %v1074_v41 = vadd.f32 %v1073_v40, %v1059_v27 }
 0x3f3   : > { %v1040_v38 = vpop.f32.mrf.mxu3 }
 0x3f4   : > { %v1060_v28 = vmul.f32 %v1611_v34, %v1040_v38 }
 0x3f6   : > { %v1075_v29 = vadd.f32 %v1074_v41, %v1060_v28 }
 0x3fb   : > { %v1043_v18 = vpop.f32.mrf.mxu3 }
 0x3fc   : > { %v1061_v16 = vmul.f32 %v1616_v35, %v1043_v18 }
 0x3fe   : > { %v1076_v0 = vadd.f32 %v1075_v29, %v1061_v16 }
 0x400   : > { %v1077_v30 = vrot.slane %v1076_v0, 4 }
 0x402   : > { %v1078_v51 = vadd.f32 %v1077_v30, %v1076_v0 }
 0x404   : > { %v1079_v50 = vrot.slane %v1078_v51, 2 }
 0x406   : > { %v1080_v31 = vadd.f32 %v1079_v50, %v1078_v51 }
 0x408   : > { %v1081_v5 = vrot.slane %v1080_v31, 1 }
 0x40a   : > { %v1082_v49 = vadd.f32 %v1081_v5, %v1080_v31 }
 0x40c   : > { %1083 = vst [vmem:[%s2606_s5] sm:$0x1] %v1082_v49 }
 0x40d PF: > { %s16_s20 = sadd.s32 1, %s1392_s20   ;;  %s2850_s18 = smov %s1388_s19 }
 0x40e   : > { %p13_p7 = scmp.ge.s32.totalorder %s16_s20, 4   ;;  %s2851_s19 = smov %s2853_s21 }
 0x410   :  { %15 = sbr.rel (!%p13_p7) target bundleno = 2 (0x2), region = 94 }

</bundles_post_ra>
